<compile_context>
chip_gen: v5e
topology: v5e:2x2
jax: 0.10.0
libtpu: 0.0.40
codegen_flags: <defaults>
</compile_context>

<pallas_src>
import functools

import jax
import jax.numpy as jnp
from jax import lax
from jax.experimental import pallas as pl
from jax.experimental.pallas import tpu as pltpu
import numpy as np


# -----------------------------------------------------------------------------
# Pallas kernel: fused batched single-layer GRU recurrence + additive attention.
# One batch-block per grid step (grid size 1 by default => single invocation).
# -----------------------------------------------------------------------------
def gru_attention_kernel(
    emb_ref,    # (1, L*Bb, E)  bf16   time-major embedded rows (row = t*Bb + b)
    wi_ref,     # (E, 3*Hp)     bf16   fused input->hidden weights [r | z | n]
    wh_ref,     # (Hp, 3*Hp)    bf16   fused hidden->hidden weights [r | z | n]
    bi_ref,     # (1, 3*Hp)     f32    fused biases [b_ir+b_hr | b_iz+b_hz | b_in]
    bhn_ref,    # (1, Hp)       f32    b_hn (only this one is scaled by r)
    wa_ref,     # (Hp, Hp)      f32    attention projection, pre-transposed
    ba_ref,     # (1, Hp)       f32
    u_ref,      # (Hp, 1)       f32    context vector column (zero in padded lanes)
    out_ref,    # (1, Bb, Hp)   f32    attention output (lane-padded hidden dim)
    attnw_ref,  # (1, Bb, Lp)   f32    attention weights, lane-padded L -> Lp
):
    _, LB, _ = emb_ref.shape
    Hp = wh_ref.shape[0]
    Bb = out_ref.shape[1]
    L = LB // Bb
    Lp = attnw_ref.shape[2]

    # One fused input projection for all timesteps/batch rows (single bf16 MXU
    # matmul, f32 accumulate). Result stays in vregs.
    gates = (jnp.dot(emb_ref[0], wi_ref[...], preferred_element_type=jnp.float32)
             + bi_ref[...])                                       # (L*Bb, 3*Hp) f32

    # Hoist loop-invariant recurrent weights / bias out of the unrolled loop.
    wh = wh_ref[...]
    bhn = bhn_ref[...]

    # Sequential GRU recurrence, fully unrolled; hidden states kept as values.
    # Padded lanes [H:Hp] stay exactly zero: padded weights/biases are zero and
    # h0 is zero, so z=0.5, n=0 there and h_pad stays 0.
    h = jnp.zeros((Bb, Hp), jnp.float32)
    hs = []
    for t in range(L):
        xg = gates[t * Bb:(t + 1) * Bb, :]                        # (Bb, 3*Hp) vreg slice
        hg = jnp.dot(h.astype(jnp.bfloat16), wh,
                     preferred_element_type=jnp.float32)          # (Bb, 3*Hp)
        r = jax.nn.sigmoid(xg[:, 0:Hp] + hg[:, 0:Hp])
        z = jax.nn.sigmoid(xg[:, Hp:2 * Hp] + hg[:, Hp:2 * Hp])
        n = jnp.tanh(xg[:, 2 * Hp:3 * Hp] + r * (hg[:, 2 * Hp:3 * Hp] + bhn))
        h = (1.0 - z) * n + z * h
        hs.append(h)

    # Additive attention: one projection matmul over all (t, b) rows plus one
    # MXU matvec for the scores (kept f32 for softmax accuracy).
    rnn = jnp.concatenate(hs, axis=0)                             # (L*Bb, Hp)
    s = jnp.tanh(jnp.dot(rnn, wa_ref[...], preferred_element_type=jnp.float32)
                 + ba_ref[...])
    col = jnp.dot(s, u_ref[...], preferred_element_type=jnp.float32)  # (L*Bb, 1)

    # Softmax over the L per-timestep score columns, entirely on vreg values.
    sc = [col[t * Bb:(t + 1) * Bb, :] for t in range(L)]          # L x (Bb, 1)
    m = functools.reduce(jnp.maximum, sc)
    es = [jnp.exp(c - m) for c in sc]
    denom = functools.reduce(jnp.add, es)
    inv = pl.reciprocal(denom, approx=True)
    ws = [e * inv for e in es]

    # Weighted sum over the sequence: L broadcast multiply-adds on (Bb, Hp) tiles.
    acc = jnp.zeros((Bb, Hp), jnp.float32)
    for t in range(L):
        acc = acc + ws[t] * hs[t]
    out_ref[0] = acc

    # Lane-dense attention-weights store (zero-padded to Lp lanes; wrapper slices).
    attnw_ref[0] = jnp.concatenate(
        ws + [jnp.zeros((Bb, Lp - L), jnp.float32)], axis=1)


# -----------------------------------------------------------------------------
# Wrapper: embedding lookup, weight fusion / padding / transposition, pallas_call.
# -----------------------------------------------------------------------------
def _pad_axis(x, axis, target):
    pad = target - x.shape[axis]
    if pad <= 0:
        return x
    widths = [(0, 0)] * x.ndim
    widths[axis] = (0, pad)
    return jnp.pad(x, widths)


@functools.partial(jax.jit, static_argnames=("f", "batch_blocks"))
def text_rnn_attention_forward(tokens, params, f=100, batch_blocks=1):
    emb_table = params["embedding"]
    B, L = tokens.shape
    E = emb_table.shape[1]
    H = params["W_hr"].shape[0]
    Hp = ((H + 127) // 128) * 128            # lane-pad hidden dim (100 -> 128)
    Lp = ((L + 127) // 128) * 128            # lane-dense attn-weights output

    # Batch sharding across TensorCores (v7x) only pays once each core's batch
    # slice fills at least a full sublane; otherwise keep a single grid step.
    nb = batch_blocks
    if B % nb != 0 or (B // nb) < 8:
        nb = 1
    Bb = B // nb

    # Embedding lookup (gather) stays in XLA glue; lay out time-major per block
    # and flatten (L, Bb) -> L*Bb host-side so the kernel LHS is an aligned load.
    embedded = jnp.take(emb_table, tokens, axis=0)                  # (B, L, E)
    embedded = (embedded.reshape(nb, Bb, L, E).transpose(0, 2, 1, 3)
                .reshape(nb, L * Bb, E).astype(jnp.bfloat16))

    # Fuse + zero-pad + pre-transpose weights; bf16 MXU operands for the GRU
    # projections (f32 accumulate in the kernel); attention weights stay f32.
    wi = jnp.concatenate(
        [_pad_axis(params[k], 0, Hp).T for k in ("W_ir", "W_iz", "W_in")],
        axis=1).astype(jnp.bfloat16)                                # (E, 3*Hp)
    wh = jnp.concatenate(
        [_pad_axis(_pad_axis(params[k], 0, Hp), 1, Hp).T
         for k in ("W_hr", "W_hz", "W_hn")],
        axis=1).astype(jnp.bfloat16)                                # (Hp, 3*Hp)
    bi = jnp.concatenate(
        [_pad_axis(params["b_ir"] + params["b_hr"], 0, Hp),
         _pad_axis(params["b_iz"] + params["b_hz"], 0, Hp),
         _pad_axis(params["b_in"], 0, Hp)]).reshape(1, 3 * Hp)
    bhn = _pad_axis(params["b_hn"], 0, Hp).reshape(1, Hp)
    wa = _pad_axis(_pad_axis(params["W_a"], 0, Hp), 1, Hp).T        # (Hp, Hp) f32
    ba = _pad_axis(params["b_a"], 0, Hp).reshape(1, Hp)
    u = _pad_axis(params["u"], 0, Hp).reshape(Hp, 1)                # MXU matvec column

    full = lambda shape: pl.BlockSpec(shape, lambda i: tuple(0 for _ in shape))

    grid_spec = pltpu.PrefetchScalarGridSpec(
        num_scalar_prefetch=0,
        grid=(nb,),
        in_specs=[
            pl.BlockSpec((1, L * Bb, E), lambda i: (i, 0, 0)),
            full((E, 3 * Hp)),
            full((Hp, 3 * Hp)),
            full((1, 3 * Hp)),
            full((1, Hp)),
            full((Hp, Hp)),
            full((1, Hp)),
            full((Hp, 1)),
        ],
        out_specs=[
            pl.BlockSpec((1, Bb, Hp), lambda i: (i, 0, 0)),
            pl.BlockSpec((1, Bb, Lp), lambda i: (i, 0, 0)),
        ],
    )

    out_p, attnw = pl.pallas_call(
        gru_attention_kernel,
        out_shape=(
            jax.ShapeDtypeStruct((nb, Bb, Hp), jnp.float32),
            jax.ShapeDtypeStruct((nb, Bb, Lp), jnp.float32),
        ),
        grid_spec=grid_spec,
        compiler_params=pltpu.CompilerParams(
            dimension_semantics=("parallel",)),
    )(embedded, wi, wh, bi, bhn, wa, ba, u)

    attn_out = out_p.reshape(B, Hp)[:, :H]          # drop lane padding
    attn_weights = attnw.reshape(B, Lp)[:, :L]      # drop lane padding

    # Dropout: eval-mode identity.
    return attn_out.reshape(B, f, H // f), attn_weights


# -----------------------------------------------------------------------------
# Pure-JAX f32 reference (for correctness check).
# -----------------------------------------------------------------------------
def reference_forward(tokens, params, f=100):
    emb = jnp.take(params["embedding"], tokens, axis=0)     # (B, L, E)
    B, L, _ = emb.shape
    H = params["W_hr"].shape[0]

    def step(h, x_t):  # h: (B, H), x_t: (B, E)
        r = jax.nn.sigmoid(x_t @ params["W_ir"].T + params["b_ir"]
                           + h @ params["W_hr"].T + params["b_hr"])
        z = jax.nn.sigmoid(x_t @ params["W_iz"].T + params["b_iz"]
                           + h @ params["W_hz"].T + params["b_hz"])
        n = jnp.tanh(x_t @ params["W_in"].T + params["b_in"]
                     + r * (h @ params["W_hn"].T + params["b_hn"]))
        h_new = (1.0 - z) * n + z * h
        return h_new, h_new

    h0 = jnp.zeros((B, H), jnp.float32)
    _, hs = lax.scan(step, h0, jnp.swapaxes(emb, 0, 1))
    rnn_out = jnp.swapaxes(hs, 0, 1)                         # (B, L, H)

    s = jnp.tanh(rnn_out @ params["W_a"].T + params["b_a"])
    scores = s @ params["u"]                                 # (B, L)
    w = jax.nn.softmax(scores, axis=1)
    weighted = jnp.einsum("bl,blh->bh", w, rnn_out)          # (B, H)
    return weighted.reshape(B, f, H // f), w


def init_params(key, vocab_size, embed_size, hidden_dim):
    keys = jax.random.split(key, 18)
    scale = 0.1
    V, E, H = vocab_size, embed_size, hidden_dim
    p = {
        "embedding": jax.random.normal(keys[0], (V, E), jnp.float32),
        "W_ir": scale * jax.random.normal(keys[1], (H, E), jnp.float32),
        "W_iz": scale * jax.random.normal(keys[2], (H, E), jnp.float32),
        "W_in": scale * jax.random.normal(keys[3], (H, E), jnp.float32),
        "W_hr": scale * jax.random.normal(keys[4], (H, H), jnp.float32),
        "W_hz": scale * jax.random.normal(keys[5], (H, H), jnp.float32),
        "W_hn": scale * jax.random.normal(keys[6], (H, H), jnp.float32),
        "b_ir": scale * jax.random.normal(keys[7], (H,), jnp.float32),
        "b_iz": scale * jax.random.normal(keys[8], (H,), jnp.float32),
        "b_in": scale * jax.random.normal(keys[9], (H,), jnp.float32),
        "b_hr": scale * jax.random.normal(keys[10], (H,), jnp.float32),
        "b_hz": scale * jax.random.normal(keys[11], (H,), jnp.float32),
        "b_hn": scale * jax.random.normal(keys[12], (H,), jnp.float32),
        "W_a": scale * jax.random.normal(keys[13], (H, H), jnp.float32),
        "b_a": scale * jax.random.normal(keys[14], (H,), jnp.float32),
        "u": jax.random.normal(keys[15], (H,), jnp.float32),
    }
    return p


if __name__ == "__main__":
    # Module config (cell='gru', num_layers=1, dropout=0.0).
    # hidden_dim=100 so the forward's hard-coded view(B, 100, H // 100) is valid.
    B, L = 2, 8
    vocab_size, embed_size, hidden_dim = 50, 32, 100

    key = jax.random.PRNGKey(0)
    pkey, tkey = jax.random.split(key)
    params = init_params(pkey, vocab_size, embed_size, hidden_dim)
    tokens = jax.random.randint(tkey, (B, L), 0, vocab_size, dtype=jnp.int32)

    attn_out, attn_w = text_rnn_attention_forward(tokens, params)
    jax.block_until_ready((attn_out, attn_w))

    ref_out, ref_w = reference_forward(tokens, params)

    assert attn_out.shape == (B, 100, hidden_dim // 100)
    assert attn_w.shape == (B, L)
    # Tolerance covers bf16 MXU operands in the GRU projections (f32 reference).
    np.testing.assert_allclose(np.asarray(attn_out), np.asarray(ref_out),
                               rtol=2e-2, atol=2e-2)
    np.testing.assert_allclose(np.asarray(attn_w), np.asarray(ref_w),
                               rtol=2e-2, atol=2e-2)
    print("KERNEL_OK")
</pallas_src>

<mosaic_0001>
module attributes {stable_mosaic.version = 11 : i64} {
  func.func @gru_attention_kernel(%arg0: i32, %arg1: memref<1x16x32xbf16, #tpu.memory_space<vmem>>, %arg2: memref<32x384xbf16, #tpu.memory_space<vmem>>, %arg3: memref<128x384xbf16, #tpu.memory_space<vmem>>, %arg4: memref<1x384xf32, #tpu.memory_space<vmem>>, %arg5: memref<1x128xf32, #tpu.memory_space<vmem>>, %arg6: memref<128x128xf32, #tpu.memory_space<vmem>>, %arg7: memref<1x128xf32, #tpu.memory_space<vmem>>, %arg8: memref<128x1xf32, #tpu.memory_space<vmem>>, %arg9: memref<1x2x128xf32, #tpu.memory_space<vmem>>, %arg10: memref<1x2x128xf32, #tpu.memory_space<vmem>>) attributes {dimension_semantics = [#tpu.dimension_semantics<parallel>], iteration_bounds = array<i64: 1>, scalar_prefetch = 0 : i64, scratch_operands = 0 : i64, tpu.core_type = #tpu.core_type<tc>, window_params = [{transform_indices = @transform_0, window_bounds = array<i64: 1, 16, 32>}, {pipeline_mode = #tpu.pipeline_mode<synchronous>, transform_indices = @transform_1, window_bounds = array<i64: 32, 384>}, {pipeline_mode = #tpu.pipeline_mode<synchronous>, transform_indices = @transform_2, window_bounds = array<i64: 128, 384>}, {pipeline_mode = #tpu.pipeline_mode<synchronous>, transform_indices = @transform_3, window_bounds = array<i64: 1, 384>}, {pipeline_mode = #tpu.pipeline_mode<synchronous>, transform_indices = @transform_4, window_bounds = array<i64: 1, 128>}, {pipeline_mode = #tpu.pipeline_mode<synchronous>, transform_indices = @transform_5, window_bounds = array<i64: 128, 128>}, {pipeline_mode = #tpu.pipeline_mode<synchronous>, transform_indices = @transform_6, window_bounds = array<i64: 1, 128>}, {pipeline_mode = #tpu.pipeline_mode<synchronous>, transform_indices = @transform_7, window_bounds = array<i64: 128, 1>}, {transform_indices = @transform_8, window_bounds = array<i64: 1, 2, 128>}, {transform_indices = @transform_9, window_bounds = array<i64: 1, 2, 128>}]} {
    %c0 = arith.constant 0 : index
    %c0_0 = arith.constant 0 : index
    %c0_1 = arith.constant 0 : index
    %0 = vector.load %arg1[%c0, %c0_0, %c0_1] : memref<1x16x32xbf16, #tpu.memory_space<vmem>>, vector<1x16x32xbf16>
    %1 = vector.shape_cast %0 : vector<1x16x32xbf16> to vector<16x32xbf16>
    %c0_2 = arith.constant 0 : index
    %c0_3 = arith.constant 0 : index
    %2 = vector.load %arg2[%c0_2, %c0_3] : memref<32x384xbf16, #tpu.memory_space<vmem>>, vector<32x384xbf16>
    %cst = arith.constant dense<0.000000e+00> : vector<16x384xf32>
    %3 = tpu.matmul %1, %2, %cst {dimension_numbers = #tpu.dot_dimension_numbers<[1], [0], [0], [1], [0, 0, 1, 1], [], []>} : vector<16x32xbf16>, vector<32x384xbf16>, vector<16x384xf32> -> vector<16x384xf32>
    %c0_4 = arith.constant 0 : index
    %c0_5 = arith.constant 0 : index
    %4 = vector.load %arg4[%c0_4, %c0_5] : memref<1x384xf32, #tpu.memory_space<vmem>>, vector<1x384xf32>
    %5 = vector.broadcast %4 : vector<1x384xf32> to vector<16x384xf32>
    %6 = arith.addf %3, %5 : vector<16x384xf32>
    %c0_6 = arith.constant 0 : index
    %c0_7 = arith.constant 0 : index
    %7 = vector.load %arg3[%c0_6, %c0_7] : memref<128x384xbf16, #tpu.memory_space<vmem>>, vector<128x384xbf16>
    %c0_8 = arith.constant 0 : index
    %c0_9 = arith.constant 0 : index
    %8 = vector.load %arg5[%c0_8, %c0_9] : memref<1x128xf32, #tpu.memory_space<vmem>>, vector<1x128xf32>
    %cst_10 = arith.constant 0.000000e+00 : f32
    %9 = vector.broadcast %cst_10 : f32 to vector<2x128xf32>
    %10 = vector.extract_strided_slice %6 {offsets = [0, 0], sizes = [2, 384], strides = [1, 1]} : vector<16x384xf32> to vector<2x384xf32>
    %11 = arith.truncf %9 : vector<2x128xf32> to vector<2x128xbf16>
    %cst_11 = arith.constant dense<0.000000e+00> : vector<2x384xf32>
    %12 = tpu.matmul %11, %7, %cst_11 {dimension_numbers = #tpu.dot_dimension_numbers<[1], [0], [0], [1], [0, 0, 1, 1], [], []>} : vector<2x128xbf16>, vector<128x384xbf16>, vector<2x384xf32> -> vector<2x384xf32>
    %13 = vector.extract_strided_slice %10 {offsets = [0, 0], sizes = [2, 128], strides = [1, 1]} : vector<2x384xf32> to vector<2x128xf32>
    %14 = vector.extract_strided_slice %12 {offsets = [0, 0], sizes = [2, 128], strides = [1, 1]} : vector<2x384xf32> to vector<2x128xf32>
    %15 = arith.addf %13, %14 : vector<2x128xf32>
    %16 = arith.negf %15 : vector<2x128xf32>
    %17 = math.exp %16 : vector<2x128xf32>
    %cst_12 = arith.constant 1.000000e+00 : f32
    %18 = vector.broadcast %cst_12 : f32 to vector<2x128xf32>
    %19 = arith.addf %18, %17 : vector<2x128xf32>
    %20 = arith.divf %18, %19 : vector<2x128xf32>
    %21 = vector.extract_strided_slice %10 {offsets = [0, 128], sizes = [2, 128], strides = [1, 1]} : vector<2x384xf32> to vector<2x128xf32>
    %22 = vector.extract_strided_slice %12 {offsets = [0, 128], sizes = [2, 128], strides = [1, 1]} : vector<2x384xf32> to vector<2x128xf32>
    %23 = arith.addf %21, %22 : vector<2x128xf32>
    %24 = arith.negf %23 : vector<2x128xf32>
    %25 = math.exp %24 : vector<2x128xf32>
    %cst_13 = arith.constant 1.000000e+00 : f32
    %26 = vector.broadcast %cst_13 : f32 to vector<2x128xf32>
    %27 = arith.addf %26, %25 : vector<2x128xf32>
    %28 = arith.divf %26, %27 : vector<2x128xf32>
    %29 = vector.extract_strided_slice %10 {offsets = [0, 256], sizes = [2, 128], strides = [1, 1]} : vector<2x384xf32> to vector<2x128xf32>
    %30 = vector.extract_strided_slice %12 {offsets = [0, 256], sizes = [2, 128], strides = [1, 1]} : vector<2x384xf32> to vector<2x128xf32>
    %31 = vector.broadcast %8 : vector<1x128xf32> to vector<2x128xf32>
    %32 = arith.addf %30, %31 : vector<2x128xf32>
    %33 = arith.mulf %20, %32 : vector<2x128xf32>
    %34 = arith.addf %29, %33 : vector<2x128xf32>
    %35 = math.tanh %34 : vector<2x128xf32>
    %cst_14 = arith.constant 1.000000e+00 : f32
    %36 = vector.broadcast %cst_14 : f32 to vector<2x128xf32>
    %37 = arith.subf %36, %28 : vector<2x128xf32>
    %38 = arith.mulf %37, %35 : vector<2x128xf32>
    %39 = arith.mulf %28, %9 : vector<2x128xf32>
    %40 = arith.addf %38, %39 : vector<2x128xf32>
    %41 = vector.extract_strided_slice %6 {offsets = [2, 0], sizes = [2, 384], strides = [1, 1]} : vector<16x384xf32> to vector<2x384xf32>
    %42 = arith.truncf %40 : vector<2x128xf32> to vector<2x128xbf16>
    %cst_15 = arith.constant dense<0.000000e+00> : vector<2x384xf32>
    %43 = tpu.matmul %42, %7, %cst_15 {dimension_numbers = #tpu.dot_dimension_numbers<[1], [0], [0], [1], [0, 0, 1, 1], [], []>} : vector<2x128xbf16>, vector<128x384xbf16>, vector<2x384xf32> -> vector<2x384xf32>
    %44 = vector.extract_strided_slice %41 {offsets = [0, 0], sizes = [2, 128], strides = [1, 1]} : vector<2x384xf32> to vector<2x128xf32>
    %45 = vector.extract_strided_slice %43 {offsets = [0, 0], sizes = [2, 128], strides = [1, 1]} : vector<2x384xf32> to vector<2x128xf32>
    %46 = arith.addf %44, %45 : vector<2x128xf32>
    %47 = arith.negf %46 : vector<2x128xf32>
    %48 = math.exp %47 : vector<2x128xf32>
    %cst_16 = arith.constant 1.000000e+00 : f32
    %49 = vector.broadcast %cst_16 : f32 to vector<2x128xf32>
    %50 = arith.addf %49, %48 : vector<2x128xf32>
    %51 = arith.divf %49, %50 : vector<2x128xf32>
    %52 = vector.extract_strided_slice %41 {offsets = [0, 128], sizes = [2, 128], strides = [1, 1]} : vector<2x384xf32> to vector<2x128xf32>
    %53 = vector.extract_strided_slice %43 {offsets = [0, 128], sizes = [2, 128], strides = [1, 1]} : vector<2x384xf32> to vector<2x128xf32>
    %54 = arith.addf %52, %53 : vector<2x128xf32>
    %55 = arith.negf %54 : vector<2x128xf32>
    %56 = math.exp %55 : vector<2x128xf32>
    %cst_17 = arith.constant 1.000000e+00 : f32
    %57 = vector.broadcast %cst_17 : f32 to vector<2x128xf32>
    %58 = arith.addf %57, %56 : vector<2x128xf32>
    %59 = arith.divf %57, %58 : vector<2x128xf32>
    %60 = vector.extract_strided_slice %41 {offsets = [0, 256], sizes = [2, 128], strides = [1, 1]} : vector<2x384xf32> to vector<2x128xf32>
    %61 = vector.extract_strided_slice %43 {offsets = [0, 256], sizes = [2, 128], strides = [1, 1]} : vector<2x384xf32> to vector<2x128xf32>
    %62 = vector.broadcast %8 : vector<1x128xf32> to vector<2x128xf32>
    %63 = arith.addf %61, %62 : vector<2x128xf32>
    %64 = arith.mulf %51, %63 : vector<2x128xf32>
    %65 = arith.addf %60, %64 : vector<2x128xf32>
    %66 = math.tanh %65 : vector<2x128xf32>
    %cst_18 = arith.constant 1.000000e+00 : f32
    %67 = vector.broadcast %cst_18 : f32 to vector<2x128xf32>
    %68 = arith.subf %67, %59 : vector<2x128xf32>
    %69 = arith.mulf %68, %66 : vector<2x128xf32>
    %70 = arith.mulf %59, %40 : vector<2x128xf32>
    %71 = arith.addf %69, %70 : vector<2x128xf32>
    %72 = vector.extract_strided_slice %6 {offsets = [4, 0], sizes = [2, 384], strides = [1, 1]} : vector<16x384xf32> to vector<2x384xf32>
    %73 = arith.truncf %71 : vector<2x128xf32> to vector<2x128xbf16>
    %cst_19 = arith.constant dense<0.000000e+00> : vector<2x384xf32>
    %74 = tpu.matmul %73, %7, %cst_19 {dimension_numbers = #tpu.dot_dimension_numbers<[1], [0], [0], [1], [0, 0, 1, 1], [], []>} : vector<2x128xbf16>, vector<128x384xbf16>, vector<2x384xf32> -> vector<2x384xf32>
    %75 = vector.extract_strided_slice %72 {offsets = [0, 0], sizes = [2, 128], strides = [1, 1]} : vector<2x384xf32> to vector<2x128xf32>
    %76 = vector.extract_strided_slice %74 {offsets = [0, 0], sizes = [2, 128], strides = [1, 1]} : vector<2x384xf32> to vector<2x128xf32>
    %77 = arith.addf %75, %76 : vector<2x128xf32>
    %78 = arith.negf %77 : vector<2x128xf32>
    %79 = math.exp %78 : vector<2x128xf32>
    %cst_20 = arith.constant 1.000000e+00 : f32
    %80 = vector.broadcast %cst_20 : f32 to vector<2x128xf32>
    %81 = arith.addf %80, %79 : vector<2x128xf32>
    %82 = arith.divf %80, %81 : vector<2x128xf32>
    %83 = vector.extract_strided_slice %72 {offsets = [0, 128], sizes = [2, 128], strides = [1, 1]} : vector<2x384xf32> to vector<2x128xf32>
    %84 = vector.extract_strided_slice %74 {offsets = [0, 128], sizes = [2, 128], strides = [1, 1]} : vector<2x384xf32> to vector<2x128xf32>
    %85 = arith.addf %83, %84 : vector<2x128xf32>
    %86 = arith.negf %85 : vector<2x128xf32>
    %87 = math.exp %86 : vector<2x128xf32>
    %cst_21 = arith.constant 1.000000e+00 : f32
    %88 = vector.broadcast %cst_21 : f32 to vector<2x128xf32>
    %89 = arith.addf %88, %87 : vector<2x128xf32>
    %90 = arith.divf %88, %89 : vector<2x128xf32>
    %91 = vector.extract_strided_slice %72 {offsets = [0, 256], sizes = [2, 128], strides = [1, 1]} : vector<2x384xf32> to vector<2x128xf32>
    %92 = vector.extract_strided_slice %74 {offsets = [0, 256], sizes = [2, 128], strides = [1, 1]} : vector<2x384xf32> to vector<2x128xf32>
    %93 = vector.broadcast %8 : vector<1x128xf32> to vector<2x128xf32>
    %94 = arith.addf %92, %93 : vector<2x128xf32>
    %95 = arith.mulf %82, %94 : vector<2x128xf32>
    %96 = arith.addf %91, %95 : vector<2x128xf32>
    %97 = math.tanh %96 : vector<2x128xf32>
    %cst_22 = arith.constant 1.000000e+00 : f32
    %98 = vector.broadcast %cst_22 : f32 to vector<2x128xf32>
    %99 = arith.subf %98, %90 : vector<2x128xf32>
    %100 = arith.mulf %99, %97 : vector<2x128xf32>
    %101 = arith.mulf %90, %71 : vector<2x128xf32>
    %102 = arith.addf %100, %101 : vector<2x128xf32>
    %103 = vector.extract_strided_slice %6 {offsets = [6, 0], sizes = [2, 384], strides = [1, 1]} : vector<16x384xf32> to vector<2x384xf32>
    %104 = arith.truncf %102 : vector<2x128xf32> to vector<2x128xbf16>
    %cst_23 = arith.constant dense<0.000000e+00> : vector<2x384xf32>
    %105 = tpu.matmul %104, %7, %cst_23 {dimension_numbers = #tpu.dot_dimension_numbers<[1], [0], [0], [1], [0, 0, 1, 1], [], []>} : vector<2x128xbf16>, vector<128x384xbf16>, vector<2x384xf32> -> vector<2x384xf32>
    %106 = vector.extract_strided_slice %103 {offsets = [0, 0], sizes = [2, 128], strides = [1, 1]} : vector<2x384xf32> to vector<2x128xf32>
    %107 = vector.extract_strided_slice %105 {offsets = [0, 0], sizes = [2, 128], strides = [1, 1]} : vector<2x384xf32> to vector<2x128xf32>
    %108 = arith.addf %106, %107 : vector<2x128xf32>
    %109 = arith.negf %108 : vector<2x128xf32>
    %110 = math.exp %109 : vector<2x128xf32>
    %cst_24 = arith.constant 1.000000e+00 : f32
    %111 = vector.broadcast %cst_24 : f32 to vector<2x128xf32>
    %112 = arith.addf %111, %110 : vector<2x128xf32>
    %113 = arith.divf %111, %112 : vector<2x128xf32>
    %114 = vector.extract_strided_slice %103 {offsets = [0, 128], sizes = [2, 128], strides = [1, 1]} : vector<2x384xf32> to vector<2x128xf32>
    %115 = vector.extract_strided_slice %105 {offsets = [0, 128], sizes = [2, 128], strides = [1, 1]} : vector<2x384xf32> to vector<2x128xf32>
    %116 = arith.addf %114, %115 : vector<2x128xf32>
    %117 = arith.negf %116 : vector<2x128xf32>
    %118 = math.exp %117 : vector<2x128xf32>
    %cst_25 = arith.constant 1.000000e+00 : f32
    %119 = vector.broadcast %cst_25 : f32 to vector<2x128xf32>
    %120 = arith.addf %119, %118 : vector<2x128xf32>
    %121 = arith.divf %119, %120 : vector<2x128xf32>
    %122 = vector.extract_strided_slice %103 {offsets = [0, 256], sizes = [2, 128], strides = [1, 1]} : vector<2x384xf32> to vector<2x128xf32>
    %123 = vector.extract_strided_slice %105 {offsets = [0, 256], sizes = [2, 128], strides = [1, 1]} : vector<2x384xf32> to vector<2x128xf32>
    %124 = vector.broadcast %8 : vector<1x128xf32> to vector<2x128xf32>
    %125 = arith.addf %123, %124 : vector<2x128xf32>
    %126 = arith.mulf %113, %125 : vector<2x128xf32>
    %127 = arith.addf %122, %126 : vector<2x128xf32>
    %128 = math.tanh %127 : vector<2x128xf32>
    %cst_26 = arith.constant 1.000000e+00 : f32
    %129 = vector.broadcast %cst_26 : f32 to vector<2x128xf32>
    %130 = arith.subf %129, %121 : vector<2x128xf32>
    %131 = arith.mulf %130, %128 : vector<2x128xf32>
    %132 = arith.mulf %121, %102 : vector<2x128xf32>
    %133 = arith.addf %131, %132 : vector<2x128xf32>
    %134 = vector.extract_strided_slice %6 {offsets = [8, 0], sizes = [2, 384], strides = [1, 1]} : vector<16x384xf32> to vector<2x384xf32>
    %135 = arith.truncf %133 : vector<2x128xf32> to vector<2x128xbf16>
    %cst_27 = arith.constant dense<0.000000e+00> : vector<2x384xf32>
    %136 = tpu.matmul %135, %7, %cst_27 {dimension_numbers = #tpu.dot_dimension_numbers<[1], [0], [0], [1], [0, 0, 1, 1], [], []>} : vector<2x128xbf16>, vector<128x384xbf16>, vector<2x384xf32> -> vector<2x384xf32>
    %137 = vector.extract_strided_slice %134 {offsets = [0, 0], sizes = [2, 128], strides = [1, 1]} : vector<2x384xf32> to vector<2x128xf32>
    %138 = vector.extract_strided_slice %136 {offsets = [0, 0], sizes = [2, 128], strides = [1, 1]} : vector<2x384xf32> to vector<2x128xf32>
    %139 = arith.addf %137, %138 : vector<2x128xf32>
    %140 = arith.negf %139 : vector<2x128xf32>
    %141 = math.exp %140 : vector<2x128xf32>
    %cst_28 = arith.constant 1.000000e+00 : f32
    %142 = vector.broadcast %cst_28 : f32 to vector<2x128xf32>
    %143 = arith.addf %142, %141 : vector<2x128xf32>
    %144 = arith.divf %142, %143 : vector<2x128xf32>
    %145 = vector.extract_strided_slice %134 {offsets = [0, 128], sizes = [2, 128], strides = [1, 1]} : vector<2x384xf32> to vector<2x128xf32>
    %146 = vector.extract_strided_slice %136 {offsets = [0, 128], sizes = [2, 128], strides = [1, 1]} : vector<2x384xf32> to vector<2x128xf32>
    %147 = arith.addf %145, %146 : vector<2x128xf32>
    %148 = arith.negf %147 : vector<2x128xf32>
    %149 = math.exp %148 : vector<2x128xf32>
    %cst_29 = arith.constant 1.000000e+00 : f32
    %150 = vector.broadcast %cst_29 : f32 to vector<2x128xf32>
    %151 = arith.addf %150, %149 : vector<2x128xf32>
    %152 = arith.divf %150, %151 : vector<2x128xf32>
    %153 = vector.extract_strided_slice %134 {offsets = [0, 256], sizes = [2, 128], strides = [1, 1]} : vector<2x384xf32> to vector<2x128xf32>
    %154 = vector.extract_strided_slice %136 {offsets = [0, 256], sizes = [2, 128], strides = [1, 1]} : vector<2x384xf32> to vector<2x128xf32>
    %155 = vector.broadcast %8 : vector<1x128xf32> to vector<2x128xf32>
    %156 = arith.addf %154, %155 : vector<2x128xf32>
    %157 = arith.mulf %144, %156 : vector<2x128xf32>
    %158 = arith.addf %153, %157 : vector<2x128xf32>
    %159 = math.tanh %158 : vector<2x128xf32>
    %cst_30 = arith.constant 1.000000e+00 : f32
    %160 = vector.broadcast %cst_30 : f32 to vector<2x128xf32>
    %161 = arith.subf %160, %152 : vector<2x128xf32>
    %162 = arith.mulf %161, %159 : vector<2x128xf32>
    %163 = arith.mulf %152, %133 : vector<2x128xf32>
    %164 = arith.addf %162, %163 : vector<2x128xf32>
    %165 = vector.extract_strided_slice %6 {offsets = [10, 0], sizes = [2, 384], strides = [1, 1]} : vector<16x384xf32> to vector<2x384xf32>
    %166 = arith.truncf %164 : vector<2x128xf32> to vector<2x128xbf16>
    %cst_31 = arith.constant dense<0.000000e+00> : vector<2x384xf32>
    %167 = tpu.matmul %166, %7, %cst_31 {dimension_numbers = #tpu.dot_dimension_numbers<[1], [0], [0], [1], [0, 0, 1, 1], [], []>} : vector<2x128xbf16>, vector<128x384xbf16>, vector<2x384xf32> -> vector<2x384xf32>
    %168 = vector.extract_strided_slice %165 {offsets = [0, 0], sizes = [2, 128], strides = [1, 1]} : vector<2x384xf32> to vector<2x128xf32>
    %169 = vector.extract_strided_slice %167 {offsets = [0, 0], sizes = [2, 128], strides = [1, 1]} : vector<2x384xf32> to vector<2x128xf32>
    %170 = arith.addf %168, %169 : vector<2x128xf32>
    %171 = arith.negf %170 : vector<2x128xf32>
    %172 = math.exp %171 : vector<2x128xf32>
    %cst_32 = arith.constant 1.000000e+00 : f32
    %173 = vector.broadcast %cst_32 : f32 to vector<2x128xf32>
    %174 = arith.addf %173, %172 : vector<2x128xf32>
    %175 = arith.divf %173, %174 : vector<2x128xf32>
    %176 = vector.extract_strided_slice %165 {offsets = [0, 128], sizes = [2, 128], strides = [1, 1]} : vector<2x384xf32> to vector<2x128xf32>
    %177 = vector.extract_strided_slice %167 {offsets = [0, 128], sizes = [2, 128], strides = [1, 1]} : vector<2x384xf32> to vector<2x128xf32>
    %178 = arith.addf %176, %177 : vector<2x128xf32>
    %179 = arith.negf %178 : vector<2x128xf32>
    %180 = math.exp %179 : vector<2x128xf32>
    %cst_33 = arith.constant 1.000000e+00 : f32
    %181 = vector.broadcast %cst_33 : f32 to vector<2x128xf32>
    %182 = arith.addf %181, %180 : vector<2x128xf32>
    %183 = arith.divf %181, %182 : vector<2x128xf32>
    %184 = vector.extract_strided_slice %165 {offsets = [0, 256], sizes = [2, 128], strides = [1, 1]} : vector<2x384xf32> to vector<2x128xf32>
    %185 = vector.extract_strided_slice %167 {offsets = [0, 256], sizes = [2, 128], strides = [1, 1]} : vector<2x384xf32> to vector<2x128xf32>
    %186 = vector.broadcast %8 : vector<1x128xf32> to vector<2x128xf32>
    %187 = arith.addf %185, %186 : vector<2x128xf32>
    %188 = arith.mulf %175, %187 : vector<2x128xf32>
    %189 = arith.addf %184, %188 : vector<2x128xf32>
    %190 = math.tanh %189 : vector<2x128xf32>
    %cst_34 = arith.constant 1.000000e+00 : f32
    %191 = vector.broadcast %cst_34 : f32 to vector<2x128xf32>
    %192 = arith.subf %191, %183 : vector<2x128xf32>
    %193 = arith.mulf %192, %190 : vector<2x128xf32>
    %194 = arith.mulf %183, %164 : vector<2x128xf32>
    %195 = arith.addf %193, %194 : vector<2x128xf32>
    %196 = vector.extract_strided_slice %6 {offsets = [12, 0], sizes = [2, 384], strides = [1, 1]} : vector<16x384xf32> to vector<2x384xf32>
    %197 = arith.truncf %195 : vector<2x128xf32> to vector<2x128xbf16>
    %cst_35 = arith.constant dense<0.000000e+00> : vector<2x384xf32>
    %198 = tpu.matmul %197, %7, %cst_35 {dimension_numbers = #tpu.dot_dimension_numbers<[1], [0], [0], [1], [0, 0, 1, 1], [], []>} : vector<2x128xbf16>, vector<128x384xbf16>, vector<2x384xf32> -> vector<2x384xf32>
    %199 = vector.extract_strided_slice %196 {offsets = [0, 0], sizes = [2, 128], strides = [1, 1]} : vector<2x384xf32> to vector<2x128xf32>
    %200 = vector.extract_strided_slice %198 {offsets = [0, 0], sizes = [2, 128], strides = [1, 1]} : vector<2x384xf32> to vector<2x128xf32>
    %201 = arith.addf %199, %200 : vector<2x128xf32>
    %202 = arith.negf %201 : vector<2x128xf32>
    %203 = math.exp %202 : vector<2x128xf32>
    %cst_36 = arith.constant 1.000000e+00 : f32
    %204 = vector.broadcast %cst_36 : f32 to vector<2x128xf32>
    %205 = arith.addf %204, %203 : vector<2x128xf32>
    %206 = arith.divf %204, %205 : vector<2x128xf32>
    %207 = vector.extract_strided_slice %196 {offsets = [0, 128], sizes = [2, 128], strides = [1, 1]} : vector<2x384xf32> to vector<2x128xf32>
    %208 = vector.extract_strided_slice %198 {offsets = [0, 128], sizes = [2, 128], strides = [1, 1]} : vector<2x384xf32> to vector<2x128xf32>
    %209 = arith.addf %207, %208 : vector<2x128xf32>
    %210 = arith.negf %209 : vector<2x128xf32>
    %211 = math.exp %210 : vector<2x128xf32>
    %cst_37 = arith.constant 1.000000e+00 : f32
    %212 = vector.broadcast %cst_37 : f32 to vector<2x128xf32>
    %213 = arith.addf %212, %211 : vector<2x128xf32>
    %214 = arith.divf %212, %213 : vector<2x128xf32>
    %215 = vector.extract_strided_slice %196 {offsets = [0, 256], sizes = [2, 128], strides = [1, 1]} : vector<2x384xf32> to vector<2x128xf32>
    %216 = vector.extract_strided_slice %198 {offsets = [0, 256], sizes = [2, 128], strides = [1, 1]} : vector<2x384xf32> to vector<2x128xf32>
    %217 = vector.broadcast %8 : vector<1x128xf32> to vector<2x128xf32>
    %218 = arith.addf %216, %217 : vector<2x128xf32>
    %219 = arith.mulf %206, %218 : vector<2x128xf32>
    %220 = arith.addf %215, %219 : vector<2x128xf32>
    %221 = math.tanh %220 : vector<2x128xf32>
    %cst_38 = arith.constant 1.000000e+00 : f32
    %222 = vector.broadcast %cst_38 : f32 to vector<2x128xf32>
    %223 = arith.subf %222, %214 : vector<2x128xf32>
    %224 = arith.mulf %223, %221 : vector<2x128xf32>
    %225 = arith.mulf %214, %195 : vector<2x128xf32>
    %226 = arith.addf %224, %225 : vector<2x128xf32>
    %227 = vector.extract_strided_slice %6 {offsets = [14, 0], sizes = [2, 384], strides = [1, 1]} : vector<16x384xf32> to vector<2x384xf32>
    %228 = arith.truncf %226 : vector<2x128xf32> to vector<2x128xbf16>
    %cst_39 = arith.constant dense<0.000000e+00> : vector<2x384xf32>
    %229 = tpu.matmul %228, %7, %cst_39 {dimension_numbers = #tpu.dot_dimension_numbers<[1], [0], [0], [1], [0, 0, 1, 1], [], []>} : vector<2x128xbf16>, vector<128x384xbf16>, vector<2x384xf32> -> vector<2x384xf32>
    %230 = vector.extract_strided_slice %227 {offsets = [0, 0], sizes = [2, 128], strides = [1, 1]} : vector<2x384xf32> to vector<2x128xf32>
    %231 = vector.extract_strided_slice %229 {offsets = [0, 0], sizes = [2, 128], strides = [1, 1]} : vector<2x384xf32> to vector<2x128xf32>
    %232 = arith.addf %230, %231 : vector<2x128xf32>
    %233 = arith.negf %232 : vector<2x128xf32>
    %234 = math.exp %233 : vector<2x128xf32>
    %cst_40 = arith.constant 1.000000e+00 : f32
    %235 = vector.broadcast %cst_40 : f32 to vector<2x128xf32>
    %236 = arith.addf %235, %234 : vector<2x128xf32>
    %237 = arith.divf %235, %236 : vector<2x128xf32>
    %238 = vector.extract_strided_slice %227 {offsets = [0, 128], sizes = [2, 128], strides = [1, 1]} : vector<2x384xf32> to vector<2x128xf32>
    %239 = vector.extract_strided_slice %229 {offsets = [0, 128], sizes = [2, 128], strides = [1, 1]} : vector<2x384xf32> to vector<2x128xf32>
    %240 = arith.addf %238, %239 : vector<2x128xf32>
    %241 = arith.negf %240 : vector<2x128xf32>
    %242 = math.exp %241 : vector<2x128xf32>
    %cst_41 = arith.constant 1.000000e+00 : f32
    %243 = vector.broadcast %cst_41 : f32 to vector<2x128xf32>
    %244 = arith.addf %243, %242 : vector<2x128xf32>
    %245 = arith.divf %243, %244 : vector<2x128xf32>
    %246 = vector.extract_strided_slice %227 {offsets = [0, 256], sizes = [2, 128], strides = [1, 1]} : vector<2x384xf32> to vector<2x128xf32>
    %247 = vector.extract_strided_slice %229 {offsets = [0, 256], sizes = [2, 128], strides = [1, 1]} : vector<2x384xf32> to vector<2x128xf32>
    %248 = vector.broadcast %8 : vector<1x128xf32> to vector<2x128xf32>
    %249 = arith.addf %247, %248 : vector<2x128xf32>
    %250 = arith.mulf %237, %249 : vector<2x128xf32>
    %251 = arith.addf %246, %250 : vector<2x128xf32>
    %252 = math.tanh %251 : vector<2x128xf32>
    %cst_42 = arith.constant 1.000000e+00 : f32
    %253 = vector.broadcast %cst_42 : f32 to vector<2x128xf32>
    %254 = arith.subf %253, %245 : vector<2x128xf32>
    %255 = arith.mulf %254, %252 : vector<2x128xf32>
    %256 = arith.mulf %245, %226 : vector<2x128xf32>
    %257 = arith.addf %255, %256 : vector<2x128xf32>
    %258 = tpu.concatenate %40, %71, %102, %133, %164, %195, %226, %257 in 0 : vector<2x128xf32>, vector<2x128xf32>, vector<2x128xf32>, vector<2x128xf32>, vector<2x128xf32>, vector<2x128xf32>, vector<2x128xf32>, vector<2x128xf32> -> vector<16x128xf32>
    %c0_43 = arith.constant 0 : index
    %c0_44 = arith.constant 0 : index
    %259 = vector.load %arg6[%c0_43, %c0_44] : memref<128x128xf32, #tpu.memory_space<vmem>>, vector<128x128xf32>
    %cst_45 = arith.constant dense<0.000000e+00> : vector<16x128xf32>
    %260 = tpu.matmul %258, %259, %cst_45 {dimension_numbers = #tpu.dot_dimension_numbers<[1], [0], [0], [1], [0, 0, 1, 1], [], []>} : vector<16x128xf32>, vector<128x128xf32>, vector<16x128xf32> -> vector<16x128xf32>
    %c0_46 = arith.constant 0 : index
    %c0_47 = arith.constant 0 : index
    %261 = vector.load %arg7[%c0_46, %c0_47] : memref<1x128xf32, #tpu.memory_space<vmem>>, vector<1x128xf32>
    %262 = vector.broadcast %261 : vector<1x128xf32> to vector<16x128xf32>
    %263 = arith.addf %260, %262 : vector<16x128xf32>
    %264 = math.tanh %263 : vector<16x128xf32>
    %c0_48 = arith.constant 0 : index
    %c0_49 = arith.constant 0 : index
    %265 = vector.load %arg8[%c0_48, %c0_49] : memref<128x1xf32, #tpu.memory_space<vmem>>, vector<128x1xf32>
    %cst_50 = arith.constant dense<0.000000e+00> : vector<16x1xf32>
    %266 = tpu.matmul %264, %265, %cst_50 {dimension_numbers = #tpu.dot_dimension_numbers<[1], [0], [0], [1], [0, 0, 1, 1], [], []>} : vector<16x128xf32>, vector<128x1xf32>, vector<16x1xf32> -> vector<16x1xf32>
    %267 = vector.extract_strided_slice %266 {offsets = [0, 0], sizes = [2, 1], strides = [1, 1]} : vector<16x1xf32> to vector<2x1xf32>
    %268 = vector.extract_strided_slice %266 {offsets = [2, 0], sizes = [2, 1], strides = [1, 1]} : vector<16x1xf32> to vector<2x1xf32>
    %269 = vector.extract_strided_slice %266 {offsets = [4, 0], sizes = [2, 1], strides = [1, 1]} : vector<16x1xf32> to vector<2x1xf32>
    %270 = vector.extract_strided_slice %266 {offsets = [6, 0], sizes = [2, 1], strides = [1, 1]} : vector<16x1xf32> to vector<2x1xf32>
    %271 = vector.extract_strided_slice %266 {offsets = [8, 0], sizes = [2, 1], strides = [1, 1]} : vector<16x1xf32> to vector<2x1xf32>
    %272 = vector.extract_strided_slice %266 {offsets = [10, 0], sizes = [2, 1], strides = [1, 1]} : vector<16x1xf32> to vector<2x1xf32>
    %273 = vector.extract_strided_slice %266 {offsets = [12, 0], sizes = [2, 1], strides = [1, 1]} : vector<16x1xf32> to vector<2x1xf32>
    %274 = vector.extract_strided_slice %266 {offsets = [14, 0], sizes = [2, 1], strides = [1, 1]} : vector<16x1xf32> to vector<2x1xf32>
    %275 = arith.maximumf %267, %268 : vector<2x1xf32>
    %276 = arith.maximumf %275, %269 : vector<2x1xf32>
    %277 = arith.maximumf %276, %270 : vector<2x1xf32>
    %278 = arith.maximumf %277, %271 : vector<2x1xf32>
    %279 = arith.maximumf %278, %272 : vector<2x1xf32>
    %280 = arith.maximumf %279, %273 : vector<2x1xf32>
    %281 = arith.maximumf %280, %274 : vector<2x1xf32>
    %282 = arith.subf %267, %281 : vector<2x1xf32>
    %283 = math.exp %282 : vector<2x1xf32>
    %284 = arith.subf %268, %281 : vector<2x1xf32>
    %285 = math.exp %284 : vector<2x1xf32>
    %286 = arith.subf %269, %281 : vector<2x1xf32>
    %287 = math.exp %286 : vector<2x1xf32>
    %288 = arith.subf %270, %281 : vector<2x1xf32>
    %289 = math.exp %288 : vector<2x1xf32>
    %290 = arith.subf %271, %281 : vector<2x1xf32>
    %291 = math.exp %290 : vector<2x1xf32>
    %292 = arith.subf %272, %281 : vector<2x1xf32>
    %293 = math.exp %292 : vector<2x1xf32>
    %294 = arith.subf %273, %281 : vector<2x1xf32>
    %295 = math.exp %294 : vector<2x1xf32>
    %296 = arith.subf %274, %281 : vector<2x1xf32>
    %297 = math.exp %296 : vector<2x1xf32>
    %298 = arith.addf %283, %285 : vector<2x1xf32>
    %299 = arith.addf %298, %287 : vector<2x1xf32>
    %300 = arith.addf %299, %289 : vector<2x1xf32>
    %301 = arith.addf %300, %291 : vector<2x1xf32>
    %302 = arith.addf %301, %293 : vector<2x1xf32>
    %303 = arith.addf %302, %295 : vector<2x1xf32>
    %304 = arith.addf %303, %297 : vector<2x1xf32>
    %305 = tpu.reciprocal %304 {approx = true} : vector<2x1xf32> -> vector<2x1xf32>
    %306 = arith.mulf %283, %305 : vector<2x1xf32>
    %307 = arith.mulf %285, %305 : vector<2x1xf32>
    %308 = arith.mulf %287, %305 : vector<2x1xf32>
    %309 = arith.mulf %289, %305 : vector<2x1xf32>
    %310 = arith.mulf %291, %305 : vector<2x1xf32>
    %311 = arith.mulf %293, %305 : vector<2x1xf32>
    %312 = arith.mulf %295, %305 : vector<2x1xf32>
    %313 = arith.mulf %297, %305 : vector<2x1xf32>
    %cst_51 = arith.constant 0.000000e+00 : f32
    %314 = vector.broadcast %cst_51 : f32 to vector<2x128xf32>
    %315 = vector.broadcast %306 : vector<2x1xf32> to vector<2x128xf32>
    %316 = arith.mulf %315, %40 : vector<2x128xf32>
    %317 = arith.addf %314, %316 : vector<2x128xf32>
    %318 = vector.broadcast %307 : vector<2x1xf32> to vector<2x128xf32>
    %319 = arith.mulf %318, %71 : vector<2x128xf32>
    %320 = arith.addf %317, %319 : vector<2x128xf32>
    %321 = vector.broadcast %308 : vector<2x1xf32> to vector<2x128xf32>
    %322 = arith.mulf %321, %102 : vector<2x128xf32>
    %323 = arith.addf %320, %322 : vector<2x128xf32>
    %324 = vector.broadcast %309 : vector<2x1xf32> to vector<2x128xf32>
    %325 = arith.mulf %324, %133 : vector<2x128xf32>
    %326 = arith.addf %323, %325 : vector<2x128xf32>
    %327 = vector.broadcast %310 : vector<2x1xf32> to vector<2x128xf32>
    %328 = arith.mulf %327, %164 : vector<2x128xf32>
    %329 = arith.addf %326, %328 : vector<2x128xf32>
    %330 = vector.broadcast %311 : vector<2x1xf32> to vector<2x128xf32>
    %331 = arith.mulf %330, %195 : vector<2x128xf32>
    %332 = arith.addf %329, %331 : vector<2x128xf32>
    %333 = vector.broadcast %312 : vector<2x1xf32> to vector<2x128xf32>
    %334 = arith.mulf %333, %226 : vector<2x128xf32>
    %335 = arith.addf %332, %334 : vector<2x128xf32>
    %336 = vector.broadcast %313 : vector<2x1xf32> to vector<2x128xf32>
    %337 = arith.mulf %336, %257 : vector<2x128xf32>
    %338 = arith.addf %335, %337 : vector<2x128xf32>
    %c0_52 = arith.constant 0 : index
    %c0_53 = arith.constant 0 : index
    %c0_54 = arith.constant 0 : index
    %339 = vector.load %arg9[%c0_52, %c0_53, %c0_54] : memref<1x2x128xf32, #tpu.memory_space<vmem>>, vector<1x2x128xf32>
    %340 = vector.shape_cast %339 : vector<1x2x128xf32> to vector<2x128xf32>
    %341 = vector.shape_cast %338 : vector<2x128xf32> to vector<1x2x128xf32>
    tpu.vector_store %arg9[%c0_52, %c0_53, %c0_54], %341 {strides = array<i32>} : memref<1x2x128xf32, #tpu.memory_space<vmem>>, vector<1x2x128xf32>,
    %cst_55 = arith.constant 0.000000e+00 : f32
    %342 = vector.broadcast %cst_55 : f32 to vector<2x120xf32>
    %343 = tpu.concatenate %306, %307, %308, %309, %310, %311, %312, %313, %342 in 1 : vector<2x1xf32>, vector<2x1xf32>, vector<2x1xf32>, vector<2x1xf32>, vector<2x1xf32>, vector<2x1xf32>, vector<2x1xf32>, vector<2x1xf32>, vector<2x120xf32> -> vector<2x128xf32>
    %c0_56 = arith.constant 0 : index
    %c0_57 = arith.constant 0 : index
    %c0_58 = arith.constant 0 : index
    %344 = vector.load %arg10[%c0_56, %c0_57, %c0_58] : memref<1x2x128xf32, #tpu.memory_space<vmem>>, vector<1x2x128xf32>
    %345 = vector.shape_cast %344 : vector<1x2x128xf32> to vector<2x128xf32>
    %346 = vector.shape_cast %343 : vector<2x128xf32> to vector<1x2x128xf32>
    tpu.vector_store %arg10[%c0_56, %c0_57, %c0_58], %346 {strides = array<i32>} : memref<1x2x128xf32, #tpu.memory_space<vmem>>, vector<1x2x128xf32>,
    return
  }
  func.func @transform_0(%arg0: i32) -> (i32, i32, i32) {
    %c0_i32 = arith.constant 0 : i32
    %c0_i32_0 = arith.constant 0 : i32
    %c0_i32_1 = arith.constant 0 : i32
    return %arg0, %c0_i32, %c0_i32_0 : i32, i32, i32
  }
  func.func @transform_1(%arg0: i32) -> (i32, i32) {
    %c0_i32 = arith.constant 0 : i32
    %c0_i32_0 = arith.constant 0 : i32
    %c0_i32_1 = arith.constant 0 : i32
    return %c0_i32, %c0_i32_0 : i32, i32
  }
  func.func @transform_2(%arg0: i32) -> (i32, i32) {
    %c0_i32 = arith.constant 0 : i32
    %c0_i32_0 = arith.constant 0 : i32
    %c0_i32_1 = arith.constant 0 : i32
    return %c0_i32, %c0_i32_0 : i32, i32
  }
  func.func @transform_3(%arg0: i32) -> (i32, i32) {
    %c0_i32 = arith.constant 0 : i32
    %c0_i32_0 = arith.constant 0 : i32
    %c0_i32_1 = arith.constant 0 : i32
    return %c0_i32, %c0_i32_0 : i32, i32
  }
  func.func @transform_4(%arg0: i32) -> (i32, i32) {
    %c0_i32 = arith.constant 0 : i32
    %c0_i32_0 = arith.constant 0 : i32
    %c0_i32_1 = arith.constant 0 : i32
    return %c0_i32, %c0_i32_0 : i32, i32
  }
  func.func @transform_5(%arg0: i32) -> (i32, i32) {
    %c0_i32 = arith.constant 0 : i32
    %c0_i32_0 = arith.constant 0 : i32
    %c0_i32_1 = arith.constant 0 : i32
    return %c0_i32, %c0_i32_0 : i32, i32
  }
  func.func @transform_6(%arg0: i32) -> (i32, i32) {
    %c0_i32 = arith.constant 0 : i32
    %c0_i32_0 = arith.constant 0 : i32
    %c0_i32_1 = arith.constant 0 : i32
    return %c0_i32, %c0_i32_0 : i32, i32
  }
  func.func @transform_7(%arg0: i32) -> (i32, i32) {
    %c0_i32 = arith.constant 0 : i32
    %c0_i32_0 = arith.constant 0 : i32
    %c0_i32_1 = arith.constant 0 : i32
    return %c0_i32, %c0_i32_0 : i32, i32
  }
  func.func @transform_8(%arg0: i32) -> (i32, i32, i32) {
    %c0_i32 = arith.constant 0 : i32
    %c0_i32_0 = arith.constant 0 : i32
    %c0_i32_1 = arith.constant 0 : i32
    return %arg0, %c0_i32, %c0_i32_0 : i32, i32, i32
  }
  func.func @transform_9(%arg0: i32) -> (i32, i32, i32) {
    %c0_i32 = arith.constant 0 : i32
    %c0_i32_0 = arith.constant 0 : i32
    %c0_i32_1 = arith.constant 0 : i32
    return %arg0, %c0_i32, %c0_i32_0 : i32, i32, i32
  }
}

</mosaic_0001>

<bundles_post_ra>
// kernel: text_rnn_attention_forward.1
= control target key start
LH: loop header
LB: loop body
LE: loop exit
PB: predicated region body
PF: predicated region fallthrough
CT: control target
= control target key end

     0   :  { %15 = vsyncpa [#allocation3], 0  ;;  %vm89_vm0 = vcmask 261120   ;;  %v1773_v55 = vmov 0   ;;  %s2511_s0 = inlined_call_operand.vmem [shape: bf16[1,16,32], index: 0, kind: input, shape index: {}]   ;;  %s2512_s1 = inlined_call_operand.vmem [shape: bf16[32,384], index: 1, kind: input, shape index: {}]   ;;  %s2513_s2 = inlined_call_operand.vmem [shape: bf16[128,384], index: 2, kind: input, shape index: {}]   ;;  %s2514_s3 = inlined_call_operand.vmem [shape: f32[1,384], index: 3, kind: input, shape index: {}]   ;;  %s2515_s4 = inlined_call_operand.vmem [shape: f32[1,128], index: 4, kind: input, shape index: {}]   ;;  %s2516_s5 = inlined_call_operand.vmem [shape: f32[128,128], index: 5, kind: input, shape index: {}]   ;;  %s2517_s6 = inlined_call_operand.vmem [shape: f32[1,128], index: 6, kind: input, shape index: {}]   ;;  %s2518_s7 = inlined_call_operand.vmem [shape: f32[128,1], index: 7, kind: input, shape index: {}]   ;;  %s2519_s8 = inlined_call_operand.hbm [shape: f32[1,2,128], index: 8, kind: output, shape index: {0}]   ;;  %s2520_s9 = inlined_call_operand.hbm [shape: f32[1,2,128], index: 9, kind: output, shape index: {1}]  }
   0x1   :  { %v1546_v0 = vld [vmem:[%s2513_s2 + $0xa8] sm:$0xf]  ;;  %v1601_v1 = vld [vmem:[%s2513_s2 + $0xb0] sm:$0xf0]  ;;  %v1600_v2 = vld [vmem:[%s2513_s2 + $0xac] sm:$0xf]  ;;  %1614 = vset.pattern.permute.xlu2 %v1773_v55  ;;  %1613 = vset.pattern.permute.xlu0 %v1773_v55 }
   0x2   :  { %v1842_v3 = vor.u32 %v1601_v1, %v1546_v0  ;;  %v1548_v4 = vld [vmem:[%s2513_s2 + $0xb4] sm:$0xf0]  ;;  %v1534_v5 = vld [vmem:[%s2513_s2 + $0x90] sm:$0xf]  ;;  %v1598_v6 = vld [vmem:[%s2513_s2 + $0x98] sm:$0xf0]  ;;  %1615 = vset.pattern.permute.xlu1 %v1773_v55 }
   0x3   :  { %v1853_v7 = vor.u32 %v1600_v2, %v1548_v4  ;;  %v1597_v8 = vld [vmem:[%s2513_s2 + $0x94] sm:$0xf]  ;;  %v1536_v9 = vld [vmem:[%s2513_s2 + $0x9c] sm:$0xf0]  ;;  %v1447_v10 = vld [vmem:[%s2512_s1 + $0x18] sm:$0xf]  ;;  %v1865_v11 = vor.u32 %v1598_v6, %v1534_v5 }
   0x4   :  { %296 = vmatpush.bf16.msra.mxu3 %v1842_v3  ;;  %v1577_v12 = vld [vmem:[%s2512_s1 + $0x20] sm:$0xf0]  ;;  %v1871_v13 = vor.u32 %v1597_v8, %v1536_v9  ;;  %v1522_v15 = vld [vmem:[%s2513_s2 + $0x78] sm:$0xf]  ;;  %v1435_v17 = vld [vmem:[%s2512_s1] sm:$0xf] }
   0x5   :  { %309 = vmatpush.bf16.msra.mxu0 %v1853_v7  ;;  %v1448_v14 = vor.u32 %v1577_v12, %v1447_v10  ;;  %v1595_v16 = vld [vmem:[%s2513_s2 + $0x80] sm:$0xf0]  ;;  %v1594_v18 = vld [vmem:[%s2513_s2 + $0x7c] sm:$0xf]  ;;  %v1524_v19 = vld [vmem:[%s2513_s2 + $0x84] sm:$0xf0] }
   0x6   :  { %v1574_v20 = vld [vmem:[%s2512_s1 + $0x8] sm:$0xf0]  ;;  %v1892_v22 = vor.u32 %v1595_v16, %v1522_v15  ;;  %v1510_v23 = vld [vmem:[%s2513_s2 + $0x60] sm:$0xf]  ;;  %v1898_v24 = vor.u32 %v1594_v18, %v1524_v19  ;;  %v1591_v26 = vld [vmem:[%s2513_s2 + $0x64] sm:$0xf] }
   0x7   :  { %99 = vmatpush.bf16.msra.mxu1 %v1448_v14  ;;  %v1436_v21 = vor.u32 %v1574_v20, %v1435_v17  ;;  %v1592_v25 = vld [vmem:[%s2513_s2 + $0x68] sm:$0xf0]  ;;  %v1512_v27 = vld [vmem:[%s2513_s2 + $0x6c] sm:$0xf0]  ;;  %v1912_v28 = vld [vmem:[%s2511_s0] sm:$0xff] }
   0x8   :  { %297 = vmatpush.bf16.msra.mxu3 %v1865_v11  ;;  %v1576_v29 = vld [vmem:[%s2512_s1 + $0x1c] sm:$0xf]  ;;  %v1449_v30 = vld [vmem:[%s2512_s1 + $0x24] sm:$0xf0]  ;;  %v1921_v32 = vor.u32 %v1592_v25, %v1510_v23  ;;  %v1573_v34 = vld [vmem:[%s2512_s1 + $0x4] sm:$0xf]  ;;  %v1933_v36 = vor.u32 %v1591_v26, %v1512_v27 }
   0x9   :  { %310 = vmatpush.bf16.msra.mxu0 %v1871_v13  ;;  %v1452_v31 = vor.u32 %v1576_v29, %v1449_v30  ;;  %v1498_v33 = vld [vmem:[%s2513_s2 + $0x48] sm:$0xf]  ;;  %v1437_v35 = vld [vmem:[%s2512_s1 + $0xc] sm:$0xf0]  ;;  %v1589_v37 = vld [vmem:[%s2513_s2 + $0x50] sm:$0xf0] }
   0xa   :  { %v1440_v38 = vor.u32 %v1573_v34, %v1437_v35  ;;  %v1554_v39 = vld [vmem:[%s2513_s2 + $0xb0] sm:$0xf]  ;;  %v1602_v40 = vld [vmem:[%s2513_s2 + $0xb8] sm:$0xf0]  ;;  %v1588_v41 = vld [vmem:[%s2513_s2 + $0x4c] sm:$0xf]  ;;  %v1961_v46 = vor.u32 %v1589_v37, %v1498_v33 }
   0xb   :  { %100 = vmatpush.bf16.msra.mxu1 %v1436_v21  ;;  %v1500_v42 = vld [vmem:[%s2513_s2 + $0x54] sm:$0xf0]  ;;  %v1952_v43 = vor.u32 %v1602_v40, %v1554_v39  ;;  %v1599_v45 = vld [vmem:[%s2513_s2 + $0xa0] sm:$0xf0]  ;;  %v1486_v47 = vld [vmem:[%s2513_s2 + $0x30] sm:$0xf] }
   0xc   :  { %298 = vmatpush.bf16.msra.mxu3 %v1892_v22  ;;  %v1542_v44 = vld [vmem:[%s2513_s2 + $0x98] sm:$0xf]  ;;  %v1967_v48 = vor.u32 %v1588_v41, %v1500_v42  ;;  %v1586_v49 = vld [vmem:[%s2513_s2 + $0x38] sm:$0xf0]  ;;  %v1585_v50 = vld [vmem:[%s2513_s2 + $0x34] sm:$0xf] }
   0xd   :  { %311 = vmatpush.bf16.msra.mxu0 %v1898_v24  ;;  %v1488_v51 = vld [vmem:[%s2513_s2 + $0x3c] sm:$0xf0]  ;;  %v1979_v52 = vor.u32 %v1599_v45, %v1542_v44  ;;  %v1578_v54 = vld [vmem:[%s2512_s1 + $0x28] sm:$0xf0]  ;;  %v1443_v59 = vld [vmem:[%s2512_s1 + $0x8] sm:$0xf]  ;;  %v2000_v60 = vor.u32 %v1586_v49, %v1486_v47 }
   0xe   :  { %1457 = vmatmul.msk.bf16.vlgmr.msra.gmra.mxu1 %vm89_vm0, %v1912_v28  ;;  %v1455_v53 = vld [vmem:[%s2512_s1 + $0x20] sm:$0xf]  ;;  %v1596_v57 = vld [vmem:[%s2513_s2 + $0x88] sm:$0xf0]  ;;  %v1575_v61 = vld [vmem:[%s2512_s1 + $0x10] sm:$0xf0]  ;;  %v2006_v62 = vor.u32 %v1585_v50, %v1488_v51 }
   0xf   :  { %113 = vmatpush.bf16.msrb.mxu1 %v1452_v31  ;;  %v1530_v56 = vld [vmem:[%s2513_s2 + $0x80] sm:$0xf]  ;;  %v1456_v58 = vor.u32 %v1578_v54, %v1455_v53  ;;  %v1474_v63 = vld [vmem:[%s2513_s2 + $0x18] sm:$0xf]  ;;  %v1583_v0 = vld [vmem:[%s2513_s2 + $0x20] sm:$0xf0]  ;;  %v1444_v2 = vor.u32 %v1575_v61, %v1443_v59 }
  0x10   :  { %299 = vmatpush.bf16.msra.mxu3 %v1921_v32  ;;  %v1582_v1 = vld [vmem:[%s2513_s2 + $0x1c] sm:$0xf]  ;;  %v1476_v4 = vld [vmem:[%s2513_s2 + $0x24] sm:$0xf0]  ;;  %v2021_v5 = vor.u32 %v1596_v57, %v1530_v56 }
  0x11   :  { %312 = vmatpush.bf16.msra.mxu0 %v1933_v36  ;;  %127 = vmatpush.bf16.msra.mxu2 %v1456_v58 }
  0x13   :  { %114 = vmatpush.bf16.msrb.mxu1 %v1440_v38 }
  0x14   :  { %300 = vmatpush.bf16.msra.mxu3 %v1961_v46 }
  0x15   :  { %313 = vmatpush.bf16.msra.mxu0 %v1967_v48 }
  0x17   :  { %322 = vmatpush.bf16.msra.mxu1 %v1952_v43 }
  0x1b   :  { %323 = vmatpush.bf16.msra.mxu1 %v1979_v52 }
  0x1c   :  { %16 = vsyncpa [#allocation5], 0  ;;  %301 = vmatpush.bf16.msra.mxu3 %v2000_v60  ;;  %v2024_v6 = vor.u32 %v1583_v0, %v1474_v63  ;;  %v1518_v8 = vld [vmem:[%s2513_s2 + $0x68] sm:$0xf]  ;;  %v1593_v9 = vld [vmem:[%s2513_s2 + $0x70] sm:$0xf0]  ;;  %314 = vmatpush.bf16.msra.mxu0 %v2006_v62  ;;  %v2033_v10 = vor.u32 %v1582_v1, %v1476_v4 }
  0x1d   :  { %v1462_v12 = vld [vmem:[%s2513_s2] sm:$0xf]  ;;  %v1580_v14 = vld [vmem:[%s2513_s2 + $0x8] sm:$0xf0]  ;;  %128 = vmatpush.bf16.msra.mxu2 %v1444_v2  ;;  %v1579_v15 = vld [vmem:[%s2513_s2 + $0x4] sm:$0xf]  ;;  %v2049_v17 = vor.u32 %v1593_v9, %v1518_v8 }
  0x1e   :  { %v1464_v16 = vld [vmem:[%s2513_s2 + $0xc] sm:$0xf0]  ;;  %v2052_v18 = vor.u32 %v1580_v14, %v1462_v12  ;;  %v1590_v20 = vld [vmem:[%s2513_s2 + $0x58] sm:$0xf0]  ;;  %1458 = vmatmul.msk.bf16.vlgmr.msrb.gmra.mxu1 %vm89_vm0, %v1912_v28  ;;  %v1494_v25 = vld [vmem:[%s2513_s2 + $0x38] sm:$0xf] }
  0x1f   :  { %324 = vmatpush.bf16.msra.mxu1 %v2021_v5  ;;  %v1506_v19 = vld [vmem:[%s2513_s2 + $0x50] sm:$0xf]  ;;  %v2063_v21 = vor.u32 %v1579_v15, %v1464_v16  ;;  %v1587_v26 = vld [vmem:[%s2513_s2 + $0x40] sm:$0xf0]  ;;  %v1584_v29 = vld [vmem:[%s2513_s2 + $0x28] sm:$0xf0] }
  0x20   :  { %302 = vmatpush.bf16.msra.mxu3 %v2024_v6  ;;  %1459 = vmatmul.msk.bf16.vlgmr.msra.gmra.mxu2 %vm89_vm0, %v1912_v28  ;;  %v2069_v23 = vor.u32 %v1590_v20, %v1506_v19  ;;  %v2084_v27 = vor.u32 %v1587_v26, %v1494_v25  ;;  %v1482_v28 = vld [vmem:[%s2513_s2 + $0x20] sm:$0xf]  ;;  %v1470_v31 = vld [vmem:[%s2513_s2 + $0x8] sm:$0xf]  ;;  %v1581_v33 = vld [vmem:[%s2513_s2 + $0x10] sm:$0xf0] }
  0x21   :  { %387 = vmatpush.bf16.msrb.mxu2 %v1842_v3  ;;  %315 = vmatpush.bf16.msra.mxu0 %v2033_v10  ;;  %v2097_v30 = vor.u32 %v1584_v29, %v1482_v28  ;;  %v2109_v34 = vor.u32 %v1581_v33, %v1470_v31  ;;  %v2169_v37 = vld [vmem:[%s2514_s3] sm:$0x7]  ;;  %s1775_s0 = smov 1   ;;  %s1776_s1 = smov 2  }
  0x22   :  { %v46_v38 = vperm.slane %v2169_v37, 0  ;;  %v47_v41 = vperm.slane %v2169_v37, 1  ;;  %v2186_v16 = vld [vmem:[%s2515_s4] ss:$0 sm:$0xff]  ;;  %v48_v26 = vperm.slane %v2169_v37, 2  ;;  %s1777_s15 = smov 3  }
  0x23   :  { %325 = vmatpush.bf16.msra.mxu1 %v2049_v17  ;;  %s1778_s16 = smov 7   ;;  %s1779_s17 = smov 5  }
  0x24   :  { %303 = vmatpush.bf16.msra.mxu3 %v2052_v18  ;;  %s1780_s18 = smov 6   ;;  %s1781_s19 = smov [#allocation2]  }
  0x25   :  { %388 = vmatpush.bf16.msrb.mxu2 %v1865_v11  ;;  %316 = vmatpush.bf16.msra.mxu0 %v2063_v21  ;;  %s1402_s2 = sshll.u32 %s1781_s19, 4  ;;  %s1404_s21 = sshll.u32 %s2519_s8, 4  ;;  %s1403_s2 = int_to_ptr.vmem [resolvable:$true] %s1402_s2  ;;  %s1405_s21 = int_to_ptr.hbm [resolvable:$true] %s1404_s21 }
  0x26   :  { %s1782_s22 = smov [#allocation4]   ;;  %s1415_s25 = sshll.u32 %s2520_s9, 4  ;;  %s1416_s25 = int_to_ptr.hbm [resolvable:$true] %s1415_s25 }
  0x27   :  { %304 = vmatmul.bf16.vlgmr.msra.gmra.mxu3 %v1773_v55  ;;  %326 = vmatpush.bf16.msra.mxu1 %v2069_v23  ;;  %s1413_s23 = sshll.u32 %s1782_s22, 4  ;;  %s1414_s23 = int_to_ptr.vmem [resolvable:$true] %s1413_s23 }
  0x28   :  { %400 = vmatpush.bf16.msrb.mxu3 %v1853_v7  ;;  %317 = vmatmul.bf16.vlgmr.msra.gmra.mxu0 %v1773_v55 }
  0x29   :  { %413 = vmatpush.bf16.msrb.mxu0 %v1952_v43  ;;  %389 = vmatpush.bf16.msrb.mxu2 %v1892_v22 }
  0x2b   :  { %327 = vmatpush.bf16.msra.mxu1 %v2084_v27 }
  0x2c   :  { %401 = vmatpush.bf16.msrb.mxu3 %v1871_v13 }
  0x2d   :  { %414 = vmatpush.bf16.msrb.mxu0 %v1979_v52  ;;  %390 = vmatpush.bf16.msrb.mxu2 %v1921_v32 }
  0x2f   :  { %328 = vmatpush.bf16.msra.mxu1 %v2097_v30 }
  0x30   :  { %402 = vmatpush.bf16.msrb.mxu3 %v1898_v24 }
  0x31   :  { %415 = vmatpush.bf16.msrb.mxu0 %v2021_v5  ;;  %391 = vmatpush.bf16.msrb.mxu2 %v1961_v46 }
  0x33   :  { %329 = vmatpush.bf16.msra.mxu1 %v2109_v34 }
  0x34   :  { %403 = vmatpush.bf16.msrb.mxu3 %v1933_v36 }
  0x35   :  { %416 = vmatpush.bf16.msrb.mxu0 %v2049_v17  ;;  %392 = vmatpush.bf16.msrb.mxu2 %v2000_v60 }
  0x36   :  { %330 = vmatmul.bf16.vlgmr.msra.gmra.mxu1 %v1773_v55 }
  0x37   :  { %490 = vmatpush.bf16.msrb.mxu1 %v1842_v3 }
  0x38   :  { %404 = vmatpush.bf16.msrb.mxu3 %v1967_v48 }
  0x39   :  { %417 = vmatpush.bf16.msrb.mxu0 %v2069_v23  ;;  %393 = vmatpush.bf16.msrb.mxu2 %v2024_v6 }
  0x3b   :  { %491 = vmatpush.bf16.msrb.mxu1 %v1865_v11 }
  0x3c   :  { %405 = vmatpush.bf16.msrb.mxu3 %v2006_v62 }
  0x3d   :  { %418 = vmatpush.bf16.msrb.mxu0 %v2084_v27  ;;  %394 = vmatpush.bf16.msrb.mxu2 %v2052_v18 }
  0x3f   :  { %492 = vmatpush.bf16.msrb.mxu1 %v1892_v22 }
  0x40   :  { %406 = vmatpush.bf16.msrb.mxu3 %v2033_v10 }
  0x41   :  { %503 = vmatpush.bf16.msra.mxu2 %v1853_v7  ;;  %419 = vmatpush.bf16.msrb.mxu0 %v2097_v30 }
  0x43   :  { %493 = vmatpush.bf16.msrb.mxu1 %v1921_v32 }
  0x44   :  { %407 = vmatpush.bf16.msrb.mxu3 %v2063_v21 }
  0x45   :  { %504 = vmatpush.bf16.msra.mxu2 %v1871_v13  ;;  %420 = vmatpush.bf16.msrb.mxu0 %v2109_v34 }
  0x47   :  { %494 = vmatpush.bf16.msrb.mxu1 %v1961_v46 }
  0x48   :  { %516 = vmatpush.bf16.msra.mxu3 %v1952_v43 }
  0x49   :  { %593 = vmatpush.bf16.msra.mxu0 %v1842_v3  ;;  %505 = vmatpush.bf16.msra.mxu2 %v1898_v24 }
  0x4b   :  { %495 = vmatpush.bf16.msrb.mxu1 %v2000_v60 }
  0x4c   :  { %517 = vmatpush.bf16.msra.mxu3 %v1979_v52 }
  0x4d   :  { %594 = vmatpush.bf16.msra.mxu0 %v1865_v11  ;;  %506 = vmatpush.bf16.msra.mxu2 %v1933_v36 }
  0x4f   :  { %496 = vmatpush.bf16.msrb.mxu1 %v2024_v6 }
  0x50   :  { %518 = vmatpush.bf16.msra.mxu3 %v2021_v5 }
  0x51   :  { %595 = vmatpush.bf16.msra.mxu0 %v1892_v22  ;;  %507 = vmatpush.bf16.msra.mxu2 %v1967_v48 }
  0x53   :  { %497 = vmatpush.bf16.msrb.mxu1 %v2052_v18 }
  0x54   :  { %519 = vmatpush.bf16.msra.mxu3 %v2049_v17 }
  0x55   :  { %596 = vmatpush.bf16.msra.mxu0 %v1921_v32  ;;  %508 = vmatpush.bf16.msra.mxu2 %v2006_v62 }
  0x57   :  { %606 = vmatpush.bf16.msra.mxu1 %v1853_v7 }
  0x58   :  { %520 = vmatpush.bf16.msra.mxu3 %v2069_v23 }
  0x59   :  { %597 = vmatpush.bf16.msra.mxu0 %v1961_v46  ;;  %509 = vmatpush.bf16.msra.mxu2 %v2033_v10 }
  0x5b   :  { %607 = vmatpush.bf16.msra.mxu1 %v1871_v13 }
  0x5c   :  { %521 = vmatpush.bf16.msra.mxu3 %v2084_v27 }
  0x5d   :  { %598 = vmatpush.bf16.msra.mxu0 %v2000_v60  ;;  %510 = vmatpush.bf16.msra.mxu2 %v2063_v21 }
  0x5f   :  { %608 = vmatpush.bf16.msra.mxu1 %v1898_v24 }
  0x60   :  { %522 = vmatpush.bf16.msra.mxu3 %v2097_v30 }
  0x61   :  { %599 = vmatpush.bf16.msra.mxu0 %v2024_v6 }
  0x63   :  { %609 = vmatpush.bf16.msra.mxu1 %v1933_v36 }
  0x64   :  { %523 = vmatpush.bf16.msra.mxu3 %v2109_v34 }
  0x65   :  { %600 = vmatpush.bf16.msra.mxu0 %v2052_v18 }
  0x67   :  { %610 = vmatpush.bf16.msra.mxu1 %v1967_v48 }
  0x6b   :  { %611 = vmatpush.bf16.msra.mxu1 %v2006_v62 }
  0x6f   :  { %612 = vmatpush.bf16.msra.mxu1 %v2033_v10 }
  0x73   :  { %613 = vmatpush.bf16.msra.mxu1 %v2063_v21 }
  0x8b   :  { %v102_v35 = vpop.f32.mrf.mxu1 }
  0x8c   :  { %v2180_v53 = vadd.f32 %v102_v35, %v46_v38 }
  0x93   :  { %v104_v39 = vpop.f32.mrf.mxu1 }
  0x94   :  { %v2172_v40 = vadd.f32 %v104_v39, %v46_v38 }
  0x9b   :  { %v116_v42 = vpop.f32.mrf.mxu1 }
  0x9c   :  { %v2175_v44 = vadd.f32 %v116_v42, %v47_v41 }
  0xa3   :  { %v118_v49 = vpop.f32.mrf.mxu1  ;;  %v130_v35 = vpop.f32.mrf.mxu2 }
  0xa4   :  { %v2178_v51 = vadd.f32 %v118_v49, %v47_v41  ;;  %v2192_v41 = vadd.f32 %v130_v35, %v48_v26 }
  0xa5   :  { %v318_v45 = vpop.f32.mrf.mxu0 }
  0xa6   :  { %v355_v47 = vadd.f32 %v318_v45, %v2175_v44 }
  0xa8   :  { %v1557_v50 = vmul.f32 -1.442695, %v355_v47 }
  0xaa   :  { %1618 = vpow2.f32 %v1557_v50  ;;  %v305_v54 = vpop.f32.mrf.mxu3 }
  0xab   :  { %v335_v55 = vadd.f32 %v305_v54, %v2180_v53 }
  0xad   :  { %v1556_v56 = vmul.f32 -1.442695, %v335_v55  ;;  %v320_v57 = vpop.f32.mrf.mxu0 }
  0xaf   :  { %1620 = vpow2.f32 %v1556_v56 }
  0xb0   :  { %v1619_v58 = vpop.eup %1618 }
  0xb1   :  { %v359_v59 = vadd.f32 1.0, %v1619_v58 }
  0xb2   :  { %v307_v61 = vpop.f32.mrf.mxu3 }
  0xb3   :  { %1622 = vrcp.f32 %v359_v59  ;;  %v331_v63 = vpop.f32.mrf.mxu1  ;;  %vm365_vm3 = vweird.f32 %v359_v59  ;;  %v371_v38 = vand.u32 2147483648, %v359_v59  ;;  %v369_v45 = vand.u32 2147483647, %v359_v59 }
  0xb4   :  { %v378_v31 = vadd.f32 %v2186_v16, %v331_v63 }
  0xb5   :  { %v1621_v0 = vpop.eup %1620  ;;  %v372_v50 = vor.u32 1.1754944e-38, %v371_v38  ;;  %vm370_vm8 = vcmp.eq.f32.partialorder %v369_v45, 8.507059e+37 }
  0xb6   :  { %v339_v1 = vadd.f32 1.0, %v1621_v0 }
  0xb8   :  { %1624 = vrcp.f32 %v339_v1  ;;  %v351_v19 = vand.u32 2147483648, %v339_v1  ;;  %v349_v25 = vand.u32 2147483647, %v339_v1  ;;  %vm345_vm2 = vweird.f32 %v339_v1 }
  0xb9   :  { %v1623_v2 = vpop.eup %1622 }
  0xba   :  { %v361_v8 = vmul.f32 %v1623_v2, %v359_v59  ;;  %vm366_vm4 = vweird.f32 %v1623_v2  ;;  %v352_v33 = vor.u32 1.1754944e-38, %v351_v19  ;;  %vm350_vm6 = vcmp.eq.f32.partialorder %v349_v25, 8.507059e+37  ;;  %v2223_v59 = vpop.f32.mrf.mxu2 }
  0xbb   :  { %v333_v4 = vpop.f32.mrf.mxu1  ;;  %vm367_vm7 = vmor %vm365_vm3, %vm366_vm4 }
  0xbc   :  { %v362_v14 = vsub.f32 1.0, %v361_v8 }
  0xbe   :  { %v1625_v9 = vpop.eup %1624  ;;  %v363_v28 = vmul.f32 %v1623_v2, %v362_v14 }
  0xbf   :  { %v341_v12 = vmul.f32 %v1625_v9, %v339_v1  ;;  %vm346_vm1 = vweird.f32 %v1625_v9 }
  0xc0   :  { %vm347_vm5 = vmor %vm345_vm2, %vm346_vm1  ;;  %v364_v42 = vadd.f32 %v1623_v2, %v363_v28 }
  0xc1   :  { %v342_v15 = vsub.f32 1.0, %v341_v12 }
  0xc2   :  { %v368_v55 = vsel %vm367_vm7, %v1623_v2, %v364_v42 }
  0xc3   :  { %v343_v20 = vmul.f32 %v1625_v9, %v342_v15  ;;  %v373_v56 = vsel %vm370_vm8, %v372_v50, %v368_v55 }
  0xc4   :  { %v382_v57 = vsub.f32 1.0, %v373_v56  ;;  %v384_v63 = vmul.f32 0.0, %v373_v56 }
  0xc5   :  { %v344_v29 = vadd.f32 %v1625_v9, %v343_v20 }
  0xc7   :  { %v348_v39 = vsel %vm347_vm5, %v1625_v9, %v344_v29 }
  0xc8   :  { %v353_v47 = vsel %vm350_vm6, %v352_v33, %v348_v39 }
  0xc9   :  { %v379_v49 = vmul.f32 %v378_v31, %v353_v47 }
  0xcb   :  { %v380_v54 = vadd.f32 %v379_v49, %v2192_v41 }
  0xcd   :  { %1626 = vtanh.f32 %v380_v54 }
  0xd3   :  { %v1627_v58 = vpop.eup %1626 }
  0xd4   :  { %v383_v61 = vmul.f32 %v1627_v58, %v382_v57 }
  0xd6   :  { %v2195_v0 = vadd.f32 %v384_v63, %v383_v61 }
  0xd8   :  { %v386_v1 = vpack.c.bf16 %v2195_v0, %v2195_v0 }
  0xda   :  { %395 = vmatmul.bf16.vlgmr.msrb.gmra.mxu2 %v386_v1  ;;  %408 = vmatmul.bf16.vlgmr.msrb.gmra.mxu3 %v386_v1 }
  0xdb   :  { %421 = vmatmul.bf16.vlgmr.msrb.gmra.mxu0 %v386_v1  ;;  %619 = vmatpush.bf16.msrb.mxu2 %v1952_v43 }
  0xdc   :  { %696 = vmatpush.bf16.msrb.mxu3 %v1842_v3  ;;  %709 = vmatpush.bf16.msrb.mxu0 %v1853_v7 }
  0xdf   :  { %620 = vmatpush.bf16.msrb.mxu2 %v1979_v52 }
  0xe0   :  { %697 = vmatpush.bf16.msrb.mxu3 %v1865_v11  ;;  %710 = vmatpush.bf16.msrb.mxu0 %v1871_v13 }
  0xe3   :  { %621 = vmatpush.bf16.msrb.mxu2 %v2021_v5 }
  0xe4   :  { %698 = vmatpush.bf16.msrb.mxu3 %v1892_v22  ;;  %711 = vmatpush.bf16.msrb.mxu0 %v1898_v24 }
  0xe7   :  { %622 = vmatpush.bf16.msrb.mxu2 %v2049_v17 }
  0xe8   :  { %699 = vmatpush.bf16.msrb.mxu3 %v1921_v32  ;;  %712 = vmatpush.bf16.msrb.mxu0 %v1933_v36 }
  0xeb   :  { %623 = vmatpush.bf16.msrb.mxu2 %v2069_v23 }
  0xec   :  { %700 = vmatpush.bf16.msrb.mxu3 %v1961_v46  ;;  %713 = vmatpush.bf16.msrb.mxu0 %v1967_v48 }
  0xef   :  { %624 = vmatpush.bf16.msrb.mxu2 %v2084_v27 }
  0xf0   :  { %701 = vmatpush.bf16.msrb.mxu3 %v2000_v60  ;;  %714 = vmatpush.bf16.msrb.mxu0 %v2006_v62 }
  0xf3   :  { %625 = vmatpush.bf16.msrb.mxu2 %v2097_v30 }
  0xf4   :  { %702 = vmatpush.bf16.msrb.mxu3 %v2024_v6  ;;  %715 = vmatpush.bf16.msrb.mxu0 %v2033_v10 }
  0xf7   :  { %626 = vmatpush.bf16.msrb.mxu2 %v2109_v34 }
  0xf8   :  { %703 = vmatpush.bf16.msrb.mxu3 %v2052_v18  ;;  %716 = vmatpush.bf16.msrb.mxu0 %v2063_v21 }
 0x158   :  { %v422_v2 = vpop.f32.mrf.mxu0 }
 0x159   :  { %v472_v55 = vadd.f32 %v2186_v16, %v422_v2 }
 0x15b   :  { %v474_v1 = vrot.slane %v472_v55, 6 }
 0x15d   :  { %v396_v4 = vpop.f32.mrf.mxu2  ;;  %v409_v8 = vpop.f32.mrf.mxu3 }
 0x15e   :  { %v427_v9 = vrot.slane %v396_v4, 6  ;;  %v450_v12 = vrot.slane %v409_v8, 6 }
 0x160   :  { %v429_v14 = vadd.f32 %v427_v9, %v2180_v53  ;;  %v452_v15 = vadd.f32 %v450_v12, %v2175_v44  ;;  %v424_v19 = vpop.f32.mrf.mxu0 }
 0x162   :  { %v1558_v20 = vmul.f32 -1.442695, %v429_v14  ;;  %v1559_v25 = vmul.f32 -1.442695, %v452_v15 }
 0x164   :  { %1628 = vpow2.f32 %v1558_v20 }
 0x165   :  { %1630 = vpow2.f32 %v1559_v25  ;;  %v398_v28 = vpop.f32.mrf.mxu2  ;;  %v411_v29 = vpop.f32.mrf.mxu3 }
 0x166   :  { %v482_v29 = vrot.slane %v2195_v0, 6 }
 0x16a   :  { %v1629_v31 = vpop.eup %1628 }
 0x16b   :  { %v1631_v33 = vpop.eup %1630  ;;  %v433_v35 = vadd.f32 1.0, %v1629_v31 }
 0x16c   :  { %v456_v38 = vadd.f32 1.0, %v1631_v33 }
 0x16d   :  { %1632 = vrcp.f32 %v433_v35  ;;  %v445_v50 = vand.u32 2147483648, %v433_v35  ;;  %v443_v57 = vand.u32 2147483647, %v433_v35  ;;  %vm439_vm10 = vweird.f32 %v433_v35 }
 0x16e   :  { %1634 = vrcp.f32 %v456_v38  ;;  %v468_v14 = vand.u32 2147483648, %v456_v38  ;;  %vm462_vm14 = vweird.f32 %v456_v38  ;;  %v466_v15 = vand.u32 2147483647, %v456_v38 }
 0x16f   :  { %v446_v63 = vor.u32 1.1754944e-38, %v445_v50  ;;  %vm444_vm12 = vcmp.eq.f32.partialorder %v443_v57, 8.507059e+37 }
 0x170   :  { %v469_v20 = vor.u32 1.1754944e-38, %v468_v14  ;;  %vm467_vm0 = vcmp.eq.f32.partialorder %v466_v15, 8.507059e+37 }
 0x173   :  { %v1633_v39 = vpop.eup %1632 }
 0x174   :  { %v1635_v42 = vpop.eup %1634  ;;  %v435_v45 = vmul.f32 %v1633_v39, %v433_v35  ;;  %vm440_vm9 = vweird.f32 %v1633_v39 }
 0x175   :  { %v458_v47 = vmul.f32 %v1635_v42, %v456_v38  ;;  %vm441_vm11 = vmor %vm439_vm10, %vm440_vm9  ;;  %vm463_vm13 = vweird.f32 %v1635_v42 }
 0x176   :  { %v436_v49 = vsub.f32 1.0, %v435_v45  ;;  %vm464_vm15 = vmor %vm462_vm14, %vm463_vm13 }
 0x177   :  { %v459_v54 = vsub.f32 1.0, %v458_v47 }
 0x178   :  { %v437_v56 = vmul.f32 %v1633_v39, %v436_v49 }
 0x179   :  { %v460_v58 = vmul.f32 %v1635_v42, %v459_v54 }
 0x17a   :  { %v438_v61 = vadd.f32 %v1633_v39, %v437_v56 }
 0x17b   :  { %v461_v9 = vadd.f32 %v1635_v42, %v460_v58 }
 0x17c   :  { %v442_v4 = vsel %vm441_vm11, %v1633_v39, %v438_v61 }
 0x17d   :  { %v447_v8 = vsel %vm444_vm12, %v446_v63, %v442_v4  ;;  %v465_v19 = vsel %vm464_vm15, %v1635_v42, %v461_v9 }
 0x17e   :  { %v476_v12 = vmul.f32 %v474_v1, %v447_v8  ;;  %v470_v25 = vsel %vm467_vm0, %v469_v20, %v465_v19 }
 0x17f   :  { %v479_v28 = vsub.f32 1.0, %v470_v25  ;;  %v484_v35 = vmul.f32 %v482_v29, %v470_v25 }
 0x180   :  { %v477_v2 = vadd.f32 %v476_v12, %v2192_v41 }
 0x182   :  { %1636 = vtanh.f32 %v477_v2 }
 0x188   :  { %v1637_v31 = vpop.eup %1636 }
 0x189   :  { %v480_v33 = vmul.f32 %v1637_v31, %v479_v28 }
 0x18b   :  { %v2230_v39 = vadd.f32 %v484_v35, %v480_v33 }
 0x18d   :  { %v486_v45 = vpack.c.bf16 %v2230_v39, %v2230_v39 }
 0x18f   :  { %v488_v38 = vrot.slane %v486_v45, 1 }
 0x191   :  { %498 = vmatmul.bf16.vlgmr.msrb.gmra.mxu1 %v488_v38  ;;  %511 = vmatmul.bf16.vlgmr.msra.gmra.mxu2 %v488_v38 }
 0x192   :  { %524 = vmatmul.bf16.vlgmr.msra.gmra.mxu3 %v488_v38  ;;  %722 = vmatpush.bf16.msrb.mxu1 %v1952_v43 }
 0x193   :  { %787 = vmatpush.bf16.msra.mxu2 %v1842_v3  ;;  %800 = vmatpush.bf16.msra.mxu3 %v1853_v7 }
 0x196   :  { %723 = vmatpush.bf16.msrb.mxu1 %v1979_v52 }
 0x197   :  { %788 = vmatpush.bf16.msra.mxu2 %v1865_v11  ;;  %801 = vmatpush.bf16.msra.mxu3 %v1871_v13 }
 0x19a   :  { %724 = vmatpush.bf16.msrb.mxu1 %v2021_v5 }
 0x19b   :  { %789 = vmatpush.bf16.msra.mxu2 %v1892_v22  ;;  %802 = vmatpush.bf16.msra.mxu3 %v1898_v24 }
 0x19e   :  { %725 = vmatpush.bf16.msrb.mxu1 %v2049_v17 }
 0x19f   :  { %790 = vmatpush.bf16.msra.mxu2 %v1921_v32  ;;  %803 = vmatpush.bf16.msra.mxu3 %v1933_v36 }
 0x1a2   :  { %726 = vmatpush.bf16.msrb.mxu1 %v2069_v23 }
 0x1a3   :  { %791 = vmatpush.bf16.msra.mxu2 %v1961_v46  ;;  %804 = vmatpush.bf16.msra.mxu3 %v1967_v48 }
 0x1a6   :  { %727 = vmatpush.bf16.msrb.mxu1 %v2084_v27 }
 0x1a7   :  { %792 = vmatpush.bf16.msra.mxu2 %v2000_v60  ;;  %805 = vmatpush.bf16.msra.mxu3 %v2006_v62 }
 0x1aa   :  { %728 = vmatpush.bf16.msrb.mxu1 %v2097_v30 }
 0x1ab   :  { %793 = vmatpush.bf16.msra.mxu2 %v2024_v6  ;;  %806 = vmatpush.bf16.msra.mxu3 %v2033_v10 }
 0x1ae   :  { %729 = vmatpush.bf16.msrb.mxu1 %v2109_v34 }
 0x1af   :  { %794 = vmatpush.bf16.msra.mxu2 %v2052_v18  ;;  %807 = vmatpush.bf16.msra.mxu3 %v2063_v21 }
 0x20e   :  { %v499_v42 = vpop.f32.mrf.mxu1 }
 0x20f   :  { %v530_v47 = vrot.slane %v499_v42, 4 }
 0x211   :  { %v532_v49 = vadd.f32 %v530_v47, %v2180_v53 }
 0x213   :  { %v1560_v50 = vmul.f32 -1.442695, %v532_v49 }
 0x214   :  { %v512_v54 = vpop.f32.mrf.mxu2 }
 0x215   :  { %1638 = vpow2.f32 %v1560_v50  ;;  %v553_v55 = vrot.slane %v512_v54, 4  ;;  %v525_v56 = vpop.f32.mrf.mxu3 }
 0x216   :  { %v501_v57 = vpop.f32.mrf.mxu1  ;;  %v575_v28 = vadd.f32 %v2186_v16, %v525_v56 }
 0x217   :  { %v555_v58 = vadd.f32 %v553_v55, %v2175_v44 }
 0x218   :  { %v577_v42 = vrot.slane %v575_v28, 4 }
 0x219   :  { %v1561_v61 = vmul.f32 -1.442695, %v555_v58 }
 0x21b   :  { %v1639_v63 = vpop.eup %1638  ;;  %1640 = vpow2.f32 %v1561_v61 }
 0x21c   :  { %v536_v1 = vadd.f32 1.0, %v1639_v63  ;;  %v514_v4 = vpop.f32.mrf.mxu2 }
 0x21d   :  { %v527_v8 = vpop.f32.mrf.mxu3  ;;  %v585_v4 = vrot.slane %v2230_v39, 6 }
 0x21e   :  { %1642 = vrcp.f32 %v536_v1  ;;  %v548_v19 = vand.u32 2147483648, %v536_v1  ;;  %v546_v25 = vand.u32 2147483647, %v536_v1  ;;  %vm542_vm2 = vweird.f32 %v536_v1 }
 0x220   :  { %v549_v35 = vor.u32 1.1754944e-38, %v548_v19  ;;  %vm547_vm4 = vcmp.eq.f32.partialorder %v546_v25, 8.507059e+37 }
 0x221   :  { %v1641_v9 = vpop.eup %1640 }
 0x222   :  { %v559_v12 = vadd.f32 1.0, %v1641_v9 }
 0x224   :  { %v1643_v14 = vpop.eup %1642  ;;  %1644 = vrcp.f32 %v559_v12  ;;  %v571_v50 = vand.u32 2147483648, %v559_v12  ;;  %v569_v55 = vand.u32 2147483647, %v559_v12  ;;  %vm565_vm6 = vweird.f32 %v559_v12 }
 0x225   :  { %v538_v15 = vmul.f32 %v1643_v14, %v536_v1  ;;  %vm543_vm1 = vweird.f32 %v1643_v14 }
 0x226   :  { %vm544_vm3 = vmor %vm542_vm2, %vm543_vm1  ;;  %v572_v58 = vor.u32 1.1754944e-38, %v571_v50  ;;  %vm570_vm8 = vcmp.eq.f32.partialorder %v569_v55, 8.507059e+37 }
 0x227   :  { %v539_v2 = vsub.f32 1.0, %v538_v15 }
 0x229   :  { %v540_v20 = vmul.f32 %v1643_v14, %v539_v2 }
 0x22a   :  { %v1645_v29 = vpop.eup %1644 }
 0x22b   :  { %v561_v31 = vmul.f32 %v1645_v29, %v559_v12  ;;  %v541_v33 = vadd.f32 %v1643_v14, %v540_v20  ;;  %vm566_vm5 = vweird.f32 %v1645_v29 }
 0x22c   :  { %vm567_vm7 = vmor %vm565_vm6, %vm566_vm5 }
 0x22d   :  { %v562_v45 = vsub.f32 1.0, %v561_v31  ;;  %v545_v38 = vsel %vm544_vm3, %v1643_v14, %v541_v33 }
 0x22e   :  { %v550_v47 = vsel %vm547_vm4, %v549_v35, %v545_v38 }
 0x22f   :  { %v563_v49 = vmul.f32 %v1645_v29, %v562_v45  ;;  %v579_v54 = vmul.f32 %v577_v42, %v550_v47 }
 0x231   :  { %v564_v57 = vadd.f32 %v1645_v29, %v563_v49  ;;  %v580_v56 = vadd.f32 %v579_v54, %v2192_v41 }
 0x233   :  { %v568_v61 = vsel %vm567_vm7, %v1645_v29, %v564_v57  ;;  %1646 = vtanh.f32 %v580_v56 }
 0x234   :  { %v573_v63 = vsel %vm570_vm8, %v572_v58, %v568_v61 }
 0x235   :  { %v582_v1 = vsub.f32 1.0, %v573_v63  ;;  %v587_v14 = vmul.f32 %v585_v4, %v573_v63 }
 0x239   :  { %v1647_v8 = vpop.eup %1646 }
 0x23a   :  { %v583_v9 = vmul.f32 %v1647_v8, %v582_v1 }
 0x23c   :  { %v2263_v15 = vadd.f32 %v587_v14, %v583_v9 }
 0x23e   :  { %v589_v12 = vpack.c.bf16 %v2263_v15, %v2263_v15 }
 0x240   :  { %v591_v2 = vrot.slane %v589_v12, 2 }
 0x242   :  { %601 = vmatmul.bf16.vlgmr.msra.gmra.mxu0 %v591_v2  ;;  %614 = vmatmul.bf16.vlgmr.msra.gmra.mxu1 %v591_v2 }
 0x243   :  { %627 = vmatmul.bf16.vlgmr.msrb.gmra.mxu2 %v591_v2  ;;  %813 = vmatpush.bf16.msra.mxu0 %v1952_v43 }
 0x244   :  { %890 = vmatpush.bf16.msra.mxu1 %v1842_v3  ;;  %903 = vmatpush.bf16.msrb.mxu2 %v1853_v7 }
 0x247   :  { %814 = vmatpush.bf16.msra.mxu0 %v1979_v52 }
 0x248   :  { %891 = vmatpush.bf16.msra.mxu1 %v1865_v11  ;;  %904 = vmatpush.bf16.msrb.mxu2 %v1871_v13 }
 0x24b   :  { %815 = vmatpush.bf16.msra.mxu0 %v2021_v5 }
 0x24c   :  { %892 = vmatpush.bf16.msra.mxu1 %v1892_v22  ;;  %905 = vmatpush.bf16.msrb.mxu2 %v1898_v24 }
 0x24f   :  { %816 = vmatpush.bf16.msra.mxu0 %v2049_v17 }
 0x250   :  { %893 = vmatpush.bf16.msra.mxu1 %v1921_v32  ;;  %906 = vmatpush.bf16.msrb.mxu2 %v1933_v36 }
 0x253   :  { %817 = vmatpush.bf16.msra.mxu0 %v2069_v23 }
 0x254   :  { %894 = vmatpush.bf16.msra.mxu1 %v1961_v46  ;;  %907 = vmatpush.bf16.msrb.mxu2 %v1967_v48 }
 0x257   :  { %818 = vmatpush.bf16.msra.mxu0 %v2084_v27 }
 0x258   :  { %895 = vmatpush.bf16.msra.mxu1 %v2000_v60  ;;  %908 = vmatpush.bf16.msrb.mxu2 %v2006_v62 }
 0x25b   :  { %819 = vmatpush.bf16.msra.mxu0 %v2097_v30 }
 0x25c   :  { %896 = vmatpush.bf16.msra.mxu1 %v2024_v6  ;;  %909 = vmatpush.bf16.msrb.mxu2 %v2033_v10 }
 0x25f   :  { %820 = vmatpush.bf16.msra.mxu0 %v2109_v34 }
 0x260   :  { %897 = vmatpush.bf16.msra.mxu1 %v2052_v18  ;;  %910 = vmatpush.bf16.msrb.mxu2 %v2063_v21 }
 0x2bf   :  { %v602_v19 = vpop.f32.mrf.mxu0  ;;  %v615_v20 = vpop.f32.mrf.mxu1 }
 0x2c0   :  { %v633_v25 = vrot.slane %v602_v19, 2  ;;  %v656_v28 = vrot.slane %v615_v20, 2 }
 0x2c2   :  { %v635_v29 = vadd.f32 %v633_v25, %v2180_v53  ;;  %v658_v31 = vadd.f32 %v656_v28, %v2175_v44 }
 0x2c4   :  { %v1562_v33 = vmul.f32 -1.442695, %v635_v29  ;;  %v1563_v35 = vmul.f32 -1.442695, %v658_v31 }
 0x2c6   :  { %1648 = vpow2.f32 %v1562_v33  ;;  %v628_v45 = vpop.f32.mrf.mxu2 }
 0x2c7   :  { %1650 = vpow2.f32 %v1563_v35  ;;  %v604_v38 = vpop.f32.mrf.mxu0  ;;  %v617_v42 = vpop.f32.mrf.mxu1  ;;  %v678_v8 = vadd.f32 %v2186_v16, %v628_v45 }
 0x2c9   :  { %v680_v19 = vrot.slane %v678_v8, 2 }
 0x2cc   :  { %v1649_v47 = vpop.eup %1648 }
 0x2cd   :  { %v1651_v49 = vpop.eup %1650  ;;  %v639_v50 = vadd.f32 1.0, %v1649_v47  ;;  %v688_v47 = vrot.slane %v2263_v15, 6 }
 0x2ce   :  { %v662_v54 = vadd.f32 1.0, %v1651_v49  ;;  %v630_v55 = vpop.f32.mrf.mxu2 }
 0x2cf   :  { %1652 = vrcp.f32 %v639_v50  ;;  %v651_v63 = vand.u32 2147483648, %v639_v50  ;;  %v649_v4 = vand.u32 2147483647, %v639_v50  ;;  %vm645_vm10 = vweird.f32 %v639_v50 }
 0x2d0   :  { %1654 = vrcp.f32 %v662_v54  ;;  %v674_v28 = vand.u32 2147483648, %v662_v54  ;;  %vm668_vm14 = vweird.f32 %v662_v54  ;;  %v672_v31 = vand.u32 2147483647, %v662_v54 }
 0x2d1   :  { %v652_v12 = vor.u32 1.1754944e-38, %v651_v63  ;;  %vm650_vm12 = vcmp.eq.f32.partialorder %v649_v4, 8.507059e+37 }
 0x2d2   :  { %v675_v45 = vor.u32 1.1754944e-38, %v674_v28  ;;  %vm673_vm0 = vcmp.eq.f32.partialorder %v672_v31, 8.507059e+37 }
 0x2d5   :  { %v1653_v57 = vpop.eup %1652 }
 0x2d6   :  { %v1655_v56 = vpop.eup %1654  ;;  %v641_v58 = vmul.f32 %v1653_v57, %v639_v50  ;;  %vm646_vm9 = vweird.f32 %v1653_v57 }
 0x2d7   :  { %v664_v53 = vmul.f32 %v1655_v56, %v662_v54  ;;  %vm647_vm11 = vmor %vm645_vm10, %vm646_vm9  ;;  %vm669_vm13 = vweird.f32 %v1655_v56 }
 0x2d8   :  { %v642_v61 = vsub.f32 1.0, %v641_v58  ;;  %vm670_vm15 = vmor %vm668_vm14, %vm669_vm13 }
 0x2d9   :  { %v665_v44 = vsub.f32 1.0, %v664_v53 }
 0x2da   :  { %v643_v1 = vmul.f32 %v1653_v57, %v642_v61 }
 0x2db   :  { %v666_v9 = vmul.f32 %v1655_v56, %v665_v44 }
 0x2dc   :  { %v644_v14 = vadd.f32 %v1653_v57, %v643_v1 }
 0x2dd   :  { %v667_v25 = vadd.f32 %v1655_v56, %v666_v9 }
 0x2de   :  { %v648_v2 = vsel %vm647_vm11, %v1653_v57, %v644_v14 }
 0x2df   :  { %v653_v20 = vsel %vm650_vm12, %v652_v12, %v648_v2  ;;  %v671_v35 = vsel %vm670_vm15, %v1655_v56, %v667_v25 }
 0x2e0   :  { %v682_v29 = vmul.f32 %v680_v19, %v653_v20  ;;  %v676_v38 = vsel %vm673_vm0, %v675_v45, %v671_v35  ;;  %v2330_v20 = vadd.f32 %v2223_v59, %v48_v26 }
 0x2e1   :  { %v685_v42 = vsub.f32 1.0, %v676_v38  ;;  %v690_v55 = vmul.f32 %v688_v47, %v676_v38 }
 0x2e2   :  { %v683_v33 = vadd.f32 %v682_v29, %v2192_v41 }
 0x2e4   :  { %1656 = vtanh.f32 %v683_v33 }
 0x2ea   :  { %v1657_v49 = vpop.eup %1656 }
 0x2eb   :  { %v686_v50 = vmul.f32 %v1657_v49, %v685_v42 }
 0x2ed   :  { %v2296_v57 = vadd.f32 %v690_v55, %v686_v50 }
 0x2ef   :  { %v692_v58 = vpack.c.bf16 %v2296_v57, %v2296_v57  ;;  %v782_v42 = vrot.slane %v2296_v57, 6 }
 0x2f1   :  { %v694_v54 = vrot.slane %v692_v58, 3 }
 0x2f3   :  { %704 = vmatmul.bf16.vlgmr.msrb.gmra.mxu3 %v694_v54  ;;  %717 = vmatmul.bf16.vlgmr.msrb.gmra.mxu0 %v694_v54 }
 0x2f4   :  { %730 = vmatmul.bf16.vlgmr.msrb.gmra.mxu1 %v694_v54  ;;  %916 = vmatpush.bf16.msrb.mxu3 %v1952_v43 }
 0x2f5   :  { %993 = vmatpush.bf16.msrb.mxu0 %v1842_v3  ;;  %1006 = vmatpush.bf16.msrb.mxu1 %v1853_v7 }
 0x2f8   :  { %917 = vmatpush.bf16.msrb.mxu3 %v1979_v52 }
 0x2f9   :  { %994 = vmatpush.bf16.msrb.mxu0 %v1865_v11  ;;  %1007 = vmatpush.bf16.msrb.mxu1 %v1871_v13 }
 0x2fc   :  { %918 = vmatpush.bf16.msrb.mxu3 %v2021_v5 }
 0x2fd   :  { %995 = vmatpush.bf16.msrb.mxu0 %v1892_v22  ;;  %1008 = vmatpush.bf16.msrb.mxu1 %v1898_v24 }
 0x300   :  { %919 = vmatpush.bf16.msrb.mxu3 %v2049_v17 }
 0x301   :  { %996 = vmatpush.bf16.msrb.mxu0 %v1921_v32  ;;  %1009 = vmatpush.bf16.msrb.mxu1 %v1933_v36 }
 0x304   :  { %920 = vmatpush.bf16.msrb.mxu3 %v2069_v23 }
 0x305   :  { %997 = vmatpush.bf16.msrb.mxu0 %v1961_v46  ;;  %1010 = vmatpush.bf16.msrb.mxu1 %v1967_v48 }
 0x308   :  { %921 = vmatpush.bf16.msrb.mxu3 %v2084_v27 }
 0x309   :  { %998 = vmatpush.bf16.msrb.mxu0 %v2000_v60  ;;  %1011 = vmatpush.bf16.msrb.mxu1 %v2006_v62 }
 0x30c   :  { %922 = vmatpush.bf16.msrb.mxu3 %v2097_v30 }
 0x30d   :  { %999 = vmatpush.bf16.msrb.mxu0 %v2024_v6  ;;  %1012 = vmatpush.bf16.msrb.mxu1 %v2033_v10 }
 0x310   :  { %923 = vmatpush.bf16.msrb.mxu3 %v2109_v34 }
 0x311   :  { %1000 = vmatpush.bf16.msrb.mxu0 %v2052_v18  ;;  %1013 = vmatpush.bf16.msrb.mxu1 %v2063_v21 }
 0x370   :  { %v718_v3 = vpop.f32.mrf.mxu0 }
 0x371   :  { %v755_v7 = vadd.f32 %v718_v3, %v2178_v51  ;;  %v731_v11 = vpop.f32.mrf.mxu1 }
 0x372   :  { %v775_v14 = vadd.f32 %v2186_v16, %v731_v11 }
 0x373   :  { %v1565_v13 = vmul.f32 -1.442695, %v755_v7 }
 0x375   :  { %1658 = vpow2.f32 %v1565_v13  ;;  %v1113_v13 = vld [vmem:[%s2516_s5 + $0x60] sm:$0xff] }
 0x376   :  { %v705_v22 = vpop.f32.mrf.mxu3 }
 0x377   :  { %v735_v24 = vadd.f32 %v705_v22, %v2172_v40  ;;  %v1112_v22 = vld [vmem:[%s2516_s5 + $0x58] sm:$0xff] }
 0x378   :  { %v720_v32 = vpop.f32.mrf.mxu0 }
 0x379   :  { %v1564_v36 = vmul.f32 -1.442695, %v735_v24  ;;  %v733_v46 = vpop.f32.mrf.mxu1  ;;  %v1111_v32 = vld [vmem:[%s2516_s5 + $0x50] sm:$0xff] }
 0x37b   :  { %v1659_v48 = vpop.eup %1658  ;;  %1660 = vpow2.f32 %v1564_v36 }
 0x37c   :  { %v759_v60 = vadd.f32 1.0, %v1659_v48 }
 0x37e   :  { %v707_v62 = vpop.f32.mrf.mxu3  ;;  %1662 = vrcp.f32 %v759_v60  ;;  %v771_v25 = vand.u32 2147483648, %v759_v60  ;;  %vm765_vm6 = vweird.f32 %v759_v60  ;;  %v769_v29 = vand.u32 2147483647, %v759_v60 }
 0x37f   :  { %v1109_v62 = vld [vmem:[%s2516_s5 + $0x40] sm:$0xff] }
 0x380   :  { %v772_v35 = vor.u32 1.1754944e-38, %v771_v25  ;;  %vm770_vm8 = vcmp.eq.f32.partialorder %v769_v29, 8.507059e+37  ;;  %v1102_v29 = vld [vmem:[%s2516_s5 + $0x8] sm:$0xff] }
 0x381   :  { %v1661_v6 = vpop.eup %1660 }
 0x382   :  { %v739_v10 = vadd.f32 1.0, %v1661_v6  ;;  %v1108_v6 = vld [vmem:[%s2516_s5 + $0x38] sm:$0xff] }
 0x384   :  { %1664 = vrcp.f32 %v739_v10  ;;  %v1663_v18 = vpop.eup %1662  ;;  %v751_v44 = vand.u32 2147483648, %v739_v10  ;;  %v749_v1 = vand.u32 2147483647, %v739_v10  ;;  %vm745_vm2 = vweird.f32 %v739_v10 }
 0x385   :  { %v761_v21 = vmul.f32 %v1663_v18, %v759_v60  ;;  %vm766_vm5 = vweird.f32 %v1663_v18  ;;  %v1110_v60 = vld [vmem:[%s2516_s5 + $0x48] sm:$0xff] }
 0x386   :  { %v752_v9 = vor.u32 1.1754944e-38, %v751_v44  ;;  %vm750_vm4 = vcmp.eq.f32.partialorder %v749_v1, 8.507059e+37  ;;  %vm767_vm7 = vmor %vm765_vm6, %vm766_vm5  ;;  %v1105_v44 = vld [vmem:[%s2516_s5 + $0x20] sm:$0xff] }
 0x387   :  { %v762_v53 = vsub.f32 1.0, %v761_v21 }
 0x389   :  { %v763_v4 = vmul.f32 %v1663_v18, %v762_v53 }
 0x38a   :  { %v1665_v41 = vpop.eup %1664 }
 0x38b   :  { %v741_v56 = vmul.f32 %v1665_v41, %v739_v10  ;;  %vm746_vm1 = vweird.f32 %v1665_v41  ;;  %v764_v2 = vadd.f32 %v1663_v18, %v763_v4  ;;  %v1107_v10 = vld [vmem:[%s2516_s5 + $0x30] sm:$0xff] }
 0x38c   :  { %vm747_vm3 = vmor %vm745_vm2, %vm746_vm1  ;;  %vm1092_vm1 = vcmask 1041408   ;;  %vm1094_vm2 = vcmask 1043456  }
 0x38d   :  { %v742_v61 = vsub.f32 1.0, %v741_v56  ;;  %v768_v33 = vsel %vm767_vm7, %v1663_v18, %v764_v2  ;;  %v1106_v56 = vld [vmem:[%s2516_s5 + $0x28] sm:$0xff] }
 0x38e   :  { %v773_v45 = vsel %vm770_vm8, %v772_v35, %v768_v33 }
 0x38f   :  { %v743_v63 = vmul.f32 %v1665_v41, %v742_v61  ;;  %v779_v38 = vsub.f32 1.0, %v773_v45  ;;  %v784_v49 = vmul.f32 %v782_v42, %v773_v45 }
 0x391   :  { %v744_v8 = vadd.f32 %v1665_v41, %v743_v63 }
 0x393   :  { %v748_v12 = vsel %vm747_vm3, %v1665_v41, %v744_v8  ;;  %vm1096_vm3 = vcmask 1045504  }
 0x394   :  { %v753_v19 = vsel %vm750_vm4, %v752_v9, %v748_v12 }
 0x395   :  { %v776_v28 = vmul.f32 %v775_v14, %v753_v19  ;;  %v1104_v14 = vld [vmem:[%s2516_s5 + $0x18] sm:$0xff]  ;;  %v1103_v19 = vld [vmem:[%s2516_s5 + $0x10] sm:$0xff] }
 0x397   :  { %v777_v31 = vadd.f32 %v776_v28, %v2330_v20 }
 0x399   :  { %1666 = vtanh.f32 %v777_v31 }
 0x39f   :  { %v1667_v47 = vpop.eup %1666 }
 0x3a0   :  { %v780_v37 = vmul.f32 %v1667_v47, %v779_v38  ;;  %v1101_v38 = vld [vmem:[%s2516_s5] sm:$0xff] }
 0x3a2   :  { %v2334_v26 = vadd.f32 %v784_v49, %v780_v37 }
 0x3a4   :  { %v786_v59 = vpack.c.bf16 %v2334_v26, %v2334_v26 }
 0x3a6   :  { %795 = vmatmul.bf16.vlgmr.msra.gmra.mxu2 %v786_v59  ;;  %808 = vmatmul.bf16.vlgmr.msra.gmra.mxu3 %v786_v59 }
 0x3a7   :  { %821 = vmatmul.bf16.vlgmr.msra.gmra.mxu0 %v786_v59  ;;  %1019 = vmatpush.bf16.msra.mxu2 %v1952_v43 }
 0x3ab   :  { %1020 = vmatpush.bf16.msra.mxu2 %v1979_v52 }
 0x3af   :  { %1021 = vmatpush.bf16.msra.mxu2 %v2021_v5 }
 0x3b3   :  { %1022 = vmatpush.bf16.msra.mxu2 %v2049_v17 }
 0x3b7   :  { %1023 = vmatpush.bf16.msra.mxu2 %v2069_v23  ;;  %v1116_v23 = vld [vmem:[%s2516_s5 + $0x78] sm:$0xff] }
 0x3b8   :  { %1121 = vmatpush.msra.mxu3 %v1116_v23 }
 0x3bb   :  { %1024 = vmatpush.bf16.msra.mxu2 %v2084_v27  ;;  %v1115_v27 = vld [vmem:[%s2516_s5 + $0x70] sm:$0xff] }
 0x3bc   :  { %1122 = vmatpush.msra.mxu3 %v1115_v27 }
 0x3bf   :  { %1025 = vmatpush.bf16.msra.mxu2 %v2097_v30  ;;  %v1114_v30 = vld [vmem:[%s2516_s5 + $0x68] sm:$0xff] }
 0x3c0   :  { %1123 = vmatpush.msra.mxu3 %v1114_v30 }
 0x3c2   :  { %1124 = vmatpush.msra.mxu3 %v1113_v13  ;;  %v1161_v13 = vld [vmem:[%s2518_s7 + $0x78] sm:$0xff] }
 0x3c3   :  { %1026 = vmatpush.bf16.msra.mxu2 %v2109_v34  ;;  %1162 = vmatpush.msra.mxu0 %v1161_v13 }
 0x3c4   :  { %1125 = vmatpush.msra.mxu3 %v1112_v22 }
 0x3c6   :  { %1126 = vmatpush.msra.mxu3 %v1111_v32 }
 0x3c8   :  { %1127 = vmatpush.msra.mxu3 %v1110_v60  ;;  %v1159_v60 = vld [vmem:[%s2518_s7 + $0x68] sm:$0xff] }
 0x3ca   :  { %1128 = vmatpush.msra.mxu3 %v1109_v62 }
 0x3cc   :  { %1129 = vmatpush.msra.mxu3 %v1108_v6  ;;  %v1158_v6 = vld [vmem:[%s2518_s7 + $0x60] sm:$0xff] }
 0x3ce   :  { %1130 = vmatpush.msra.mxu3 %v1107_v10 }
 0x3d0   :  { %1131 = vmatpush.msra.mxu3 %v1106_v56  ;;  %v1156_v56 = vld [vmem:[%s2518_s7 + $0x50] sm:$0xff] }
 0x3d2   :  { %1132 = vmatpush.msra.mxu3 %v1105_v44  ;;  %v1154_v44 = vld [vmem:[%s2518_s7 + $0x40] sm:$0xff] }
 0x3d4   :  { %1133 = vmatpush.msra.mxu3 %v1104_v14 }
 0x3d6   :  { %1134 = vmatpush.msra.mxu3 %v1103_v19  ;;  %v1150_v19 = vld [vmem:[%s2518_s7 + $0x20] sm:$0xff] }
 0x3d8   :  { %1135 = vmatpush.msra.mxu3 %v1102_v29  ;;  %v2451_v29 = vld [vmem:[%s2515_s4] ss:$0 sm:$0xff] }
 0x3da   :  { %1136 = vmatpush.msra.mxu3 %v1101_v38 }
 0x424   :  { %v822_v50 = vpop.f32.mrf.mxu0 }
 0x425   :  { %v872_v4 = vadd.f32 %v2186_v16, %v822_v50 }
 0x427   :  { %v874_v28 = vrot.slane %v872_v4, 6  ;;  %v1153_v4 = vld [vmem:[%s2518_s7 + $0x38] sm:$0xff] }
 0x429   :  { %v796_v55 = vpop.f32.mrf.mxu2  ;;  %v809_v58 = vpop.f32.mrf.mxu3 }
 0x42a   :  { %v827_v54 = vrot.slane %v796_v55, 6  ;;  %v850_v3 = vrot.slane %v809_v58, 6  ;;  %v882_v55 = vrot.slane %v2334_v26, 6 }
 0x42c   :  { %v829_v43 = vadd.f32 %v827_v54, %v2172_v40  ;;  %v852_v52 = vadd.f32 %v850_v3, %v2178_v51  ;;  %v824_v5 = vpop.f32.mrf.mxu0 }
 0x42e   :  { %v1566_v7 = vmul.f32 -1.442695, %v829_v43  ;;  %v1567_v17 = vmul.f32 -1.442695, %v852_v52 }
 0x430   :  { %1668 = vpow2.f32 %v1566_v7  ;;  %v1093_v7 = vsel %vm1092_vm1, %v2195_v0, %v2230_v39 }
 0x431   :  { %1670 = vpow2.f32 %v1567_v17  ;;  %v798_v34 = vpop.f32.mrf.mxu2  ;;  %v811_v11 = vpop.f32.mrf.mxu3  ;;  %v1095_v17 = vsel %vm1094_vm2, %v1093_v7, %v2263_v15 }
 0x432   :  { %v1097_v23 = vsel %vm1096_vm3, %v1095_v17, %v2296_v57 }
 0x436   :  { %v1669_v24 = vpop.eup %1668 }
 0x437   :  { %v1671_v36 = vpop.eup %1670  ;;  %v833_v46 = vadd.f32 1.0, %v1669_v24 }
 0x438   :  { %v856_v48 = vadd.f32 1.0, %v1671_v36  ;;  %v1160_v36 = vld [vmem:[%s2518_s7 + $0x70] sm:$0xff] }
 0x439   :  { %1672 = vrcp.f32 %v833_v46  ;;  %v845_v63 = vand.u32 2147483648, %v833_v46  ;;  %v843_v9 = vand.u32 2147483647, %v833_v46  ;;  %vm839_vm10 = vweird.f32 %v833_v46  ;;  %1163 = vmatpush.msra.mxu0 %v1160_v36 }
 0x43a   :  { %1674 = vrcp.f32 %v856_v48  ;;  %v868_v45 = vand.u32 2147483648, %v856_v48  ;;  %vm862_vm14 = vweird.f32 %v856_v48  ;;  %v866_v42 = vand.u32 2147483647, %v856_v48 }
 0x43b   :  { %v846_v25 = vor.u32 1.1754944e-38, %v845_v63  ;;  %vm844_vm12 = vcmp.eq.f32.partialorder %v843_v9, 8.507059e+37  ;;  %1164 = vmatpush.msra.mxu0 %v1159_v60 }
 0x43c   :  { %v869_v49 = vor.u32 1.1754944e-38, %v868_v45  ;;  %vm867_vm0 = vcmp.eq.f32.partialorder %v866_v42, 8.507059e+37  ;;  %v1148_v42 = vld [vmem:[%s2518_s7 + $0x10] sm:$0xff] }
 0x43d   :  { %1165 = vmatpush.msra.mxu0 %v1158_v6 }
 0x43f   :  { %v1673_v18 = vpop.eup %1672 }
 0x440   :  { %v1675_v21 = vpop.eup %1674  ;;  %v835_v41 = vmul.f32 %v1673_v18, %v833_v46  ;;  %vm840_vm9 = vweird.f32 %v1673_v18 }
 0x441   :  { %v858_v53 = vmul.f32 %v1675_v21, %v856_v48  ;;  %vm841_vm11 = vmor %vm839_vm10, %vm840_vm9  ;;  %vm863_vm13 = vweird.f32 %v1675_v21 }
 0x442   :  { %v836_v61 = vsub.f32 1.0, %v835_v41  ;;  %vm864_vm15 = vmor %vm862_vm14, %vm863_vm13 }
 0x443   :  { %v859_v1 = vsub.f32 1.0, %v858_v53 }
 0x444   :  { %v837_v8 = vmul.f32 %v1673_v18, %v836_v61  ;;  %v1155_v61 = vld [vmem:[%s2518_s7 + $0x48] sm:$0xff] }
 0x445   :  { %v860_v12 = vmul.f32 %v1675_v21, %v859_v1 }
 0x446   :  { %v838_v2 = vadd.f32 %v1673_v18, %v837_v8  ;;  %v1152_v8 = vld [vmem:[%s2518_s7 + $0x30] sm:$0xff] }
 0x447   :  { %v861_v33 = vadd.f32 %v1675_v21, %v860_v12  ;;  %v1151_v12 = vld [vmem:[%s2518_s7 + $0x28] sm:$0xff] }
 0x448   :  { %v842_v16 = vsel %vm841_vm11, %v1673_v18, %v838_v2  ;;  %v1157_v18 = vld [vmem:[%s2518_s7 + $0x58] sm:$0xff] }
 0x449   :  { %v847_v31 = vsel %vm844_vm12, %v846_v25, %v842_v16  ;;  %v865_v37 = vsel %vm864_vm15, %v1675_v21, %v861_v33  ;;  %1166 = vmatpush.msra.mxu0 %v1157_v18  ;;  %v1149_v33 = vld [vmem:[%s2518_s7 + $0x18] sm:$0xff] }
 0x44a   :  { %v876_v35 = vmul.f32 %v874_v28, %v847_v31  ;;  %v870_v59 = vsel %vm867_vm0, %v869_v49, %v865_v37 }
 0x44b   :  { %v879_v50 = vsub.f32 1.0, %v870_v59  ;;  %v884_v3 = vmul.f32 %v882_v55, %v870_v59  ;;  %1167 = vmatpush.msra.mxu0 %v1156_v56 }
 0x44c   :  { %v877_v47 = vadd.f32 %v876_v35, %v2330_v20 }
 0x44d   :  { %1168 = vmatpush.msra.mxu0 %v1155_v61 }
 0x44e   :  { %1676 = vtanh.f32 %v877_v47 }
 0x44f   :  { %1169 = vmatpush.msra.mxu0 %v1154_v44 }
 0x451   :  { %1170 = vmatpush.msra.mxu0 %v1153_v4 }
 0x453   :  { %1171 = vmatpush.msra.mxu0 %v1152_v8 }
 0x454   :  { %v1677_v58 = vpop.eup %1676 }
 0x455   :  { %v880_v54 = vmul.f32 %v1677_v58, %v879_v50  ;;  %1172 = vmatpush.msra.mxu0 %v1151_v12  ;;  %v1147_v50 = vld [vmem:[%s2518_s7 + $0x8] sm:$0xff] }
 0x457   :  { %v2399_v43 = vadd.f32 %v884_v3, %v880_v54  ;;  %1173 = vmatpush.msra.mxu0 %v1150_v19 }
 0x459   :  { %v886_v52 = vpack.c.bf16 %v2399_v43, %v2399_v43  ;;  %1174 = vmatpush.msra.mxu0 %v1149_v33 }
 0x45b   :  { %v888_v5 = vrot.slane %v886_v52, 1  ;;  %1175 = vmatpush.msra.mxu0 %v1148_v42  ;;  %v1146_v52 = vld [vmem:[%s2518_s7] sm:$0xff] }
 0x45d   :  { %898 = vmatmul.bf16.vlgmr.msra.gmra.mxu1 %v888_v5  ;;  %911 = vmatmul.bf16.vlgmr.msrb.gmra.mxu2 %v888_v5 }
 0x45e   :  { %924 = vmatmul.bf16.vlgmr.msrb.gmra.mxu3 %v888_v5  ;;  %1176 = vmatpush.msra.mxu0 %v1147_v50 }
 0x460   :  { %1177 = vmatpush.msra.mxu0 %v1146_v52 }
 0x46e   :  { %1137 = vmatmul.f32.vlgmr.msra.gmra.mxu3 %v1097_v23 }
 0x4da   :  { %v899_v27 = vpop.f32.mrf.mxu1 }
 0x4db   :  { %v930_v30 = vrot.slane %v899_v27, 4 }
 0x4dd   :  { %v932_v34 = vadd.f32 %v930_v30, %v2172_v40 }
 0x4df   :  { %v1568_v11 = vmul.f32 -1.442695, %v932_v34 }
 0x4e0   :  { %v912_v22 = vpop.f32.mrf.mxu2 }
 0x4e1   :  { %1678 = vpow2.f32 %v1568_v11  ;;  %v953_v24 = vrot.slane %v912_v22, 4  ;;  %v925_v32 = vpop.f32.mrf.mxu3  ;;  %v985_v11 = vrot.slane %v2399_v43, 6 }
 0x4e2   :  { %v901_v46 = vpop.f32.mrf.mxu1  ;;  %v975_v31 = vadd.f32 %v2451_v29, %v925_v32 }
 0x4e3   :  { %v955_v48 = vadd.f32 %v953_v24, %v2178_v51 }
 0x4e4   :  { %v977_v59 = vrot.slane %v975_v31, 4 }
 0x4e5   :  { %v1569_v62 = vmul.f32 -1.442695, %v955_v48  ;;  %v2475_v48 = vld [vmem:[%s2517_s6] ss:$0 sm:$0xff]  ;;  %s1774_s6 = smov 4  }
 0x4e7   :  { %v1679_v10 = vpop.eup %1678  ;;  %1680 = vpow2.f32 %v1569_v62 }
 0x4e8   :  { %v936_v21 = vadd.f32 1.0, %v1679_v10  ;;  %v914_v41 = vpop.f32.mrf.mxu2 }
 0x4e9   :  { %v927_v53 = vpop.f32.mrf.mxu3 }
 0x4ea   :  { %1682 = vrcp.f32 %v936_v21  ;;  %v948_v25 = vand.u32 2147483648, %v936_v21  ;;  %v946_v16 = vand.u32 2147483647, %v936_v21  ;;  %vm942_vm5 = vweird.f32 %v936_v21 }
 0x4ec   :  { %v949_v47 = vor.u32 1.1754944e-38, %v948_v25  ;;  %vm947_vm7 = vcmp.eq.f32.partialorder %v946_v16, 8.507059e+37 }
 0x4ed   :  { %v1681_v63 = vpop.eup %1680 }
 0x4ee   :  { %v959_v1 = vadd.f32 1.0, %v1681_v63 }
 0x4f0   :  { %v1683_v9 = vpop.eup %1682  ;;  %1684 = vrcp.f32 %v959_v1  ;;  %v971_v54 = vand.u32 2147483648, %v959_v1  ;;  %v969_v5 = vand.u32 2147483647, %v959_v1  ;;  %vm965_vm9 = vweird.f32 %v959_v1 }
 0x4f1   :  { %v938_v14 = vmul.f32 %v1683_v9, %v936_v21  ;;  %vm943_vm4 = vweird.f32 %v1683_v9  ;;  %v1138_v60 = vpop.f32.mrf.mxu3 }
 0x4f2   :  { %vm944_vm6 = vmor %vm942_vm5, %vm943_vm4  ;;  %v972_v23 = vor.u32 1.1754944e-38, %v971_v54  ;;  %vm970_vm11 = vcmp.eq.f32.partialorder %v969_v5, 8.507059e+37  ;;  %v1139_v62 = vadd.f32 %v2475_v48, %v1138_v60 }
 0x4f3   :  { %v939_v2 = vsub.f32 1.0, %v938_v14 }
 0x4f5   :  { %v940_v28 = vmul.f32 %v1683_v9, %v939_v2 }
 0x4f6   :  { %v1685_v35 = vpop.eup %1684 }
 0x4f7   :  { %v961_v45 = vmul.f32 %v1685_v35, %v959_v1  ;;  %v941_v38 = vadd.f32 %v1683_v9, %v940_v28  ;;  %vm966_vm8 = vweird.f32 %v1685_v35 }
 0x4f8   :  { %vm967_vm10 = vmor %vm965_vm9, %vm966_vm8  ;;  %vm1388_vm8 = vcmask 39936   ;;  %vm1390_vm9 = vcmask 48128  }
 0x4f9   :  { %v962_v37 = vsub.f32 1.0, %v961_v45  ;;  %v945_v49 = vsel %vm944_vm6, %v1683_v9, %v941_v38 }
 0x4fa   :  { %v950_v55 = vsel %vm947_vm7, %v949_v47, %v945_v49  ;;  %vm1386_vm7 = vcmask 31744  }
 0x4fb   :  { %v963_v58 = vmul.f32 %v1685_v35, %v962_v37  ;;  %v979_v3 = vmul.f32 %v977_v59, %v950_v55 }
 0x4fd   :  { %v964_v7 = vadd.f32 %v1685_v35, %v963_v58  ;;  %v980_v17 = vadd.f32 %v979_v3, %v2330_v20 }
 0x4ff   :  { %v968_v27 = vsel %vm967_vm10, %v1685_v35, %v964_v7  ;;  %1686 = vtanh.f32 %v980_v17  ;;  %vm1392_vm10 = vcmask 56320  }
 0x500   :  { %v973_v30 = vsel %vm970_vm11, %v972_v23, %v968_v27  ;;  %1688 = vtanh.f32 %v1139_v62  ;;  %vm1394_vm11 = vcmask 64512  }
 0x501   :  { %v982_v34 = vsub.f32 1.0, %v973_v30  ;;  %v987_v24 = vmul.f32 %v985_v11, %v973_v30  ;;  %v1098_v11 = vsel %vm1092_vm1, %v2334_v26, %v2399_v43  ;;  %vm1380_vm1 = vcmask 7168  }
 0x505   :  { %v1687_v13 = vpop.eup %1686 }
 0x506   :  { %v983_v22 = vmul.f32 %v1687_v13, %v982_v34  ;;  %v1689_v6 = vpop.eup %1688 }
 0x508   :  { %v2468_v32 = vadd.f32 %v987_v24, %v983_v22 }
 0x50a   :  { %v989_v36 = vpack.c.bf16 %v2468_v32, %v2468_v32  ;;  %v1088_v17 = vrot.slane %v2468_v32, 6 }
 0x50c   :  { %v991_v46 = vrot.slane %v989_v36, 2 }
 0x50e   :  { %1001 = vmatmul.bf16.vlgmr.msrb.gmra.mxu0 %v991_v46  ;;  %1014 = vmatmul.bf16.vlgmr.msrb.gmra.mxu1 %v991_v46 }
 0x50f   :  { %1027 = vmatmul.bf16.vlgmr.msra.gmra.mxu2 %v991_v46 }
 0x51e   :  { %1178 = vmatmul.f32.vlgmr.msra.gmra.mxu0 %v1689_v6 }
 0x58b   :  { %v1002_v10 = vpop.f32.mrf.mxu0  ;;  %v1015_v18 = vpop.f32.mrf.mxu1 }
 0x58c   :  { %v1033_v21 = vrot.slane %v1002_v10, 2  ;;  %v1056_v41 = vrot.slane %v1015_v18, 2 }
 0x58e   :  { %v1035_v56 = vadd.f32 %v1033_v21, %v2172_v40  ;;  %v1058_v53 = vadd.f32 %v1056_v41, %v2178_v51 }
 0x590   :  { %v1570_v61 = vmul.f32 -1.442695, %v1035_v56  ;;  %v1571_v44 = vmul.f32 -1.442695, %v1058_v53 }
 0x592   :  { %1690 = vpow2.f32 %v1570_v61  ;;  %v1028_v63 = vpop.f32.mrf.mxu2 }
 0x593   :  { %1692 = vpow2.f32 %v1571_v44  ;;  %v1004_v1 = vpop.f32.mrf.mxu0  ;;  %v1017_v4 = vpop.f32.mrf.mxu1  ;;  %v1078_v45 = vadd.f32 %v2451_v29, %v1028_v63 }
 0x595   :  { %v1080_v49 = vrot.slane %v1078_v45, 2 }
 0x598   :  { %v1691_v8 = vpop.eup %1690 }
 0x599   :  { %v1693_v9 = vpop.eup %1692  ;;  %v1039_v14 = vadd.f32 1.0, %v1691_v8 }
 0x59a   :  { %v1062_v12 = vadd.f32 1.0, %v1693_v9  ;;  %v1030_v2 = vpop.f32.mrf.mxu2 }
 0x59b   :  { %1694 = vrcp.f32 %v1039_v14  ;;  %v1051_v31 = vand.u32 2147483648, %v1039_v14  ;;  %v1049_v35 = vand.u32 2147483647, %v1039_v14  ;;  %vm1045_vm13 = vweird.f32 %v1039_v14  ;;  %v1179_v46 = vpop.f32.mrf.mxu0 }
 0x59c   :  { %1696 = vrcp.f32 %v1062_v12  ;;  %v1074_v58 = vand.u32 2147483648, %v1062_v12  ;;  %vm1068_vm4 = vweird.f32 %v1062_v12  ;;  %v1072_v54 = vand.u32 2147483647, %v1062_v12 }
 0x59d   :  { %v1052_v47 = vor.u32 1.1754944e-38, %v1051_v31  ;;  %vm1050_vm15 = vcmp.eq.f32.partialorder %v1049_v35, 8.507059e+37  ;;  %v1186_v60 = vrot.slane %v1179_v46, 2  ;;  %v1189_v6 = vrot.slane %v1179_v46, 4 }
 0x59e   :  { %v1075_v29 = vor.u32 1.1754944e-38, %v1074_v58  ;;  %vm1073_vm6 = vcmp.eq.f32.partialorder %v1072_v54, 8.507059e+37  ;;  %v1192_v18 = vrot.slane %v1179_v46, 6 }
 0x59f   :  { %v1188_v62 = vmax.f32 %v1179_v46, %v1186_v60 }
 0x5a1   :  { %v1695_v19 = vpop.eup %1694  ;;  %v1191_v10 = vmax.f32 %v1188_v62, %v1189_v6 }
 0x5a2   :  { %v1697_v25 = vpop.eup %1696  ;;  %v1041_v28 = vmul.f32 %v1695_v19, %v1039_v14  ;;  %vm1046_vm12 = vweird.f32 %v1695_v19 }
 0x5a3   :  { %v1064_v40 = vmul.f32 %v1697_v25, %v1062_v12  ;;  %vm1047_vm14 = vmor %vm1045_vm13, %vm1046_vm12  ;;  %vm1069_vm0 = vweird.f32 %v1697_v25  ;;  %v1194_v21 = vmax.f32 %v1191_v10, %v1192_v18 }
 0x5a4   :  { %v1042_v16 = vsub.f32 1.0, %v1041_v28  ;;  %vm1070_vm5 = vmor %vm1068_vm4, %vm1069_vm0 }
 0x5a5   :  { %v1065_v51 = vsub.f32 1.0, %v1064_v40 }
 0x5a6   :  { %v1043_v33 = vmul.f32 %v1695_v19, %v1042_v16 }
 0x5a7   :  { %v1066_v38 = vmul.f32 %v1697_v25, %v1065_v51 }
 0x5a8   :  { %v1044_v42 = vadd.f32 %v1695_v19, %v1043_v33 }
 0x5a9   :  { %v1067_v50 = vadd.f32 %v1697_v25, %v1066_v38 }
 0x5aa   :  { %v1048_v37 = vsel %vm1047_vm14, %v1695_v19, %v1044_v42 }
 0x5ab   :  { %v1053_v59 = vsel %vm1050_vm15, %v1052_v47, %v1048_v37  ;;  %v1071_v52 = vsel %vm1070_vm5, %v1697_v25, %v1067_v50 }
 0x5ac   :  { %v1082_v55 = vmul.f32 %v1080_v49, %v1053_v59  ;;  %v1076_v5 = vsel %vm1073_vm6, %v1075_v29, %v1071_v52 }
 0x5ad   :  { %v1085_v7 = vsub.f32 1.0, %v1076_v5  ;;  %v1090_v30 = vmul.f32 %v1088_v17, %v1076_v5 }
 0x5ae   :  { %v1083_v3 = vadd.f32 %v1082_v55, %v2330_v20  ;;  %v1099_v20 = vsel %vm1094_vm2, %v1098_v11, %v2468_v32  ;;  %vm1382_vm2 = vcmask 15360  }
 0x5b0   :  { %1698 = vtanh.f32 %v1083_v3 }
 0x5b6   :  { %v1699_v23 = vpop.eup %1698 }
 0x5b7   :  { %v1086_v27 = vmul.f32 %v1699_v23, %v1085_v7 }
 0x5b9   :  { %v2483_v34 = vadd.f32 %v1090_v30, %v1086_v27 }
 0x5bb   :  { %v1100_v13 = vsel %vm1096_vm3, %v1099_v20, %v2483_v34  ;;  %vm1384_vm3 = vcmask 23552  }
 0x5bc   :  { %1140 = vmatmul.f32.gmra.mxu3 %v1100_v13 }
 0x63f   :  { %v1141_v22 = vpop.f32.mrf.mxu3 }
 0x640   :  { %v1142_v24 = vadd.f32 %v2475_v48, %v1141_v22 }
 0x642   :  { %1700 = vtanh.f32 %v1142_v24 }
 0x648   :  { %v1701_v36 = vpop.eup %1700 }
 0x649   :  { %1181 = vmatmul.f32.gmra.mxu0 %v1701_v36 }
 0x6c6   :  { %v1182_v41 = vpop.f32.mrf.mxu0 }
 0x6c7   :  { %v1195_v56 = vmax.f32 %v1194_v21, %v1182_v41  ;;  %v1197_v53 = vrot.slane %v1182_v41, 2  ;;  %v1200_v44 = vrot.slane %v1182_v41, 4  ;;  %v1203_v1 = vrot.slane %v1182_v41, 6 }
 0x6c9   :  { %v1199_v61 = vmax.f32 %v1195_v56, %v1197_v53 }
 0x6cb   :  { %v1202_v63 = vmax.f32 %v1199_v61, %v1200_v44 }
 0x6cd   :  { %v1205_v4 = vmax.f32 %v1202_v63, %v1203_v1 }
 0x6cf   :  { %v1210_v8 = vrot.slane %v1205_v4, 6  ;;  %v1215_v48 = vrot.slane %v1205_v4, 4  ;;  %v1220_v9 = vrot.slane %v1205_v4, 2  ;;  %v1206_v14 = vsub.f32 %v1179_v46, %v1205_v4 }
 0x6d0   :  { %v1225_v33 = vsub.f32 %v1182_v41, %v1205_v4 }
 0x6d1   :  { %v1212_v12 = vsub.f32 %v1179_v46, %v1210_v8  ;;  %v1217_v2 = vsub.f32 %v1179_v46, %v1215_v48  ;;  %v1222_v19 = vsub.f32 %v1179_v46, %v1220_v9  ;;  %v1207_v25 = vmul.f32 1.442695, %v1206_v14 }
 0x6d2   :  { %v1228_v51 = vsub.f32 %v1182_v41, %v1210_v8  ;;  %v1231_v31 = vsub.f32 %v1182_v41, %v1215_v48  ;;  %v1234_v45 = vsub.f32 %v1182_v41, %v1220_v9  ;;  %v1226_v42 = vmul.f32 1.442695, %v1225_v33 }
 0x6d3   :  { %v1213_v28 = vmul.f32 1.442695, %v1212_v12  ;;  %v1218_v40 = vmul.f32 1.442695, %v1217_v2  ;;  %v1223_v16 = vmul.f32 1.442695, %v1222_v19  ;;  %1702 = vpow2.f32 %v1207_v25 }
 0x6d4   :  { %v1229_v35 = vmul.f32 1.442695, %v1228_v51  ;;  %v1232_v38 = vmul.f32 1.442695, %v1231_v31  ;;  %v1235_v49 = vmul.f32 1.442695, %v1234_v45 }
 0x6d5   :  { %1704 = vpow2.f32 %v1213_v28 }
 0x6d6   :  { %1706 = vpow2.f32 %v1218_v40 }
 0x6d7   :  { %1708 = vpow2.f32 %v1223_v16 }
 0x6d8   :  { %1710 = vpow2.f32 %v1229_v35 }
 0x6d9   :  { %v1703_v47 = vpop.eup %1702  ;;  %1712 = vpow2.f32 %v1232_v38 }
 0x6da   :  { %1714 = vpow2.f32 %v1226_v42 }
 0x6db   :  { %v1705_v37 = vpop.eup %1704  ;;  %1716 = vpow2.f32 %v1235_v49 }
 0x6dc   :  { %v1707_v59 = vpop.eup %1706  ;;  %v1238_v50 = vrot.slane %v1705_v37, 2 }
 0x6dd   :  { %v1709_v55 = vpop.eup %1708  ;;  %v1242_v54 = vrot.slane %v1707_v59, 4 }
 0x6de   :  { %v1240_v58 = vadd.f32 %v1703_v47, %v1238_v50  ;;  %v1246_v52 = vrot.slane %v1709_v55, 6  ;;  %v1711_v29 = vpop.eup %1710 }
 0x6df   :  { %v1713_v5 = vpop.eup %1712  ;;  %v1251_v27 = vrot.slane %v1711_v29, 2 }
 0x6e0   :  { %v1244_v3 = vadd.f32 %v1242_v54, %v1240_v58  ;;  %v1715_v17 = vpop.eup %1714  ;;  %v1255_v20 = vrot.slane %v1713_v5, 4 }
 0x6e1   :  { %v1717_v30 = vpop.eup %1716 }
 0x6e2   :  { %v1248_v7 = vadd.f32 %v1246_v52, %v1244_v3  ;;  %v1259_v22 = vrot.slane %v1717_v30, 6 }
 0x6e4   :  { %v1249_v23 = vadd.f32 %v1715_v17, %v1248_v7 }
 0x6e6   :  { %v1253_v11 = vadd.f32 %v1251_v27, %v1249_v23 }
 0x6e8   :  { %v1257_v13 = vadd.f32 %v1255_v20, %v1253_v11 }
 0x6ea   :  { %v1261_v24 = vadd.f32 %v1259_v22, %v1257_v13 }
 0x6ec   :  { %1718 = vrcp.f32 %v1261_v24 }
 0x6f2   :  { %v1719_v36 = vpop.eup %1718 }
 0x6f3   :  { %v1274_v46 = vmul.f32 %v1719_v36, %v1715_v17  ;;  %v2493_v60 = vmul.f32 %v1719_v36, %v1703_v47  ;;  %v1268_v62 = vrot.slane %v1719_v36, 4  ;;  %v1265_v10 = vrot.slane %v1719_v36, 6 }
 0x6f4   :  { %v1271_v18 = vrot.slane %v1719_v36, 2 }
 0x6f5   :  { %1317 = vperm.xlu2 %1614, %v1274_v46   ;;  %1280 = vperm.xlu0 %1613, %v2493_v60   ;;  %v1270_v6 = vmul.f32 %v1707_v59, %v1268_v62  ;;  %v1267_v21 = vmul.f32 %v1705_v37, %v1265_v10  ;;  %v1275_v56 = vmul.f32 %v1711_v29, %v1265_v10 }
 0x6f6   :  { %v1273_v41 = vmul.f32 %v1709_v55, %v1271_v18  ;;  %v1276_v53 = vmul.f32 %v1713_v5, %v1268_v62  ;;  %v1277_v63 = vmul.f32 %v1717_v30, %v1271_v18 }
 0x6f7   :  { %1297 = vperm.xlu1 %1615, %v1270_v6   ;;  %v1353_v61 = vrot.slane %v1267_v21, 2  ;;  %v1357_v44 = vrot.slane %v1270_v6, 4  ;;  %v1368_v8 = vrot.slane %v1275_v56, 2 }
 0x6f8   :  { %v1361_v1 = vrot.slane %v1273_v41, 6  ;;  %v1376_v4 = vrot.slane %v1277_v63, 6  ;;  %v1372_v48 = vrot.slane %v1276_v53, 4 }
 0x6fd   :  { %1365 = vrot.lane.b32.xlu2 %v1274_v46, %s1774_s6  ;;  %1287 = vperm.xlu0 %1613, %v1267_v21  }
 0x6ff   :  { %1307 = vperm.xlu1 %1615, %v1273_v41  }
 0x705   :  { %1324 = vperm.xlu2 %1614, %v1275_v56   ;;  %1334 = vperm.xlu0 %1613, %v1276_v53  }
 0x707   :  { %1354 = vrot.lane.b32.xlu1 %v1353_v61, %s1775_s0 }
 0x70d   :  { %1358 = vrot.lane.b32.xlu2 %v1357_v44, %s1776_s1  ;;  %1344 = vperm.xlu0 %1613, %v1277_v63  }
 0x70f   :  { %1362 = vrot.lane.b32.xlu1 %v1361_v1, %s1777_s15 }
 0x715   :  { %1377 = vrot.lane.b32.xlu2 %v1376_v4, %s1778_s16  ;;  %1369 = vrot.lane.b32.xlu0 %v1368_v8, %s1779_s17 }
 0x717   :  { %1373 = vrot.lane.b32.xlu1 %v1372_v48, %s1780_s18 }
 0x74f   :  { %v1318_v9 = vpop.permute.xlu2 %1317 }
 0x750   :  { %v1320_v37 = vmul.f32 %v1318_v9, %v2334_v26 }
 0x757   :  { %v1366_v2 = vpop.permute.xlu2 %1365 }
 0x75f   :  { %v1325_v45 = vpop.permute.xlu2 %1324 }
 0x760   :  { %v1327_v49 = vmul.f32 %v1325_v45, %v2399_v43 }
 0x767   :  { %v1281_v14 = vpop.permute.xlu0 %1280 }
 0x768   :  { %v1283_v16 = vmul.f32 %v1281_v14, %v2195_v0 }
 0x769   :  { %v1298_v12 = vpop.permute.xlu1 %1297 }
 0x76a   :  { %v1300_v25 = vmul.f32 %v1298_v12, %v2263_v15 }
 0x76c   :  { %v1302_v33 = vrot.slane %v1300_v25, 4 }
 0x76f   :  { %v1288_v19 = vpop.permute.xlu0 %1287 }
 0x770   :  { %v1290_v28 = vmul.f32 %v1288_v19, %v2230_v39  ;;  %v1329_v39 = vrot.slane %v1327_v49, 2 }
 0x771   :  { %v1308_v40 = vpop.permute.xlu1 %1307 }
 0x772   :  { %v1292_v51 = vrot.slane %v1290_v28, 2  ;;  %v1310_v31 = vmul.f32 %v1308_v40, %v2296_v57  ;;  %v1359_v57 = vpop.permute.xlu2 %1358 }
 0x774   :  { %v1294_v35 = vadd.f32 %v1292_v51, %v1283_v16  ;;  %v1312_v42 = vrot.slane %v1310_v31, 6 }
 0x776   :  { %v1304_v38 = vadd.f32 %v1302_v33, %v1294_v35 }
 0x777   :  { %v1335_v47 = vpop.permute.xlu0 %1334 }
 0x778   :  { %v1314_v59 = vadd.f32 %v1312_v42, %v1304_v38  ;;  %v1337_v55 = vmul.f32 %v1335_v47, %v2468_v32 }
 0x779   :  { %v1355_v15 = vpop.permute.xlu1 %1354 }
 0x77a   :  { %v1321_v50 = vadd.f32 %v1320_v37, %v1314_v59  ;;  %v1339_v54 = vrot.slane %v1337_v55, 4  ;;  %v1381_v3 = vsel %vm1380_vm1, %v2493_v60, %v1355_v15  ;;  %v1378_v30 = vpop.permute.xlu2 %1377 }
 0x77b   :  { %v1383_v29 = vsel %vm1382_vm2, %v1381_v3, %v1359_v57 }
 0x77c   :  { %v1331_v0 = vadd.f32 %v1329_v39, %v1321_v50 }
 0x77e   :  { %v1341_v43 = vadd.f32 %v1339_v54, %v1331_v0 }
 0x77f   :  { %v1345_v58 = vpop.permute.xlu0 %1344 }
 0x780   :  { %v1347_v52 = vmul.f32 %v1345_v58, %v2483_v34 }
 0x781   :  { %v1363_v26 = vpop.permute.xlu1 %1362 }
 0x782   :  { %v1349_v32 = vrot.slane %v1347_v52, 6  ;;  %v1385_v5 = vsel %vm1384_vm3, %v1383_v29, %v1363_v26 }
 0x783   :  { %v1387_v17 = vsel %vm1386_vm7, %v1385_v5, %v1366_v2 }
 0x784   :  { %v1351_v7 = vadd.f32 %v1349_v32, %v1341_v43 }
 0x786   :  { %1352 = vst [vmem:[#allocation2] sm:$0x3] %v1351_v7 }
 0x787   :  { %v1370_v34 = vpop.permute.xlu0 %1369  ;;  %1407 = dma.vmem_to_hbm [thread:$0]  %s1403_s2, 32, %s1405_s21, [#allocation3]  }
 0x788   :  { %v1389_v23 = vsel %vm1388_vm8, %v1387_v17, %v1370_v34 }
 0x789   :  { %v1374_v27 = vpop.permute.xlu1 %1373 }
 0x78a   :  { %v1391_v11 = vsel %vm1390_vm9, %v1389_v23, %v1374_v27 }
 0x78b   :  { %v1393_v20 = vsel %vm1392_vm10, %v1391_v11, %v1378_v30 }
 0x78c   :  { %v1395_v13 = vsel %vm1394_vm11, %v1393_v20, 0.0 }
 0x78d   :  { %1396 = vst [vmem:[#allocation4] sm:$0x3] %v1395_v13 }
 0x78e   :  { %1418 = dma.vmem_to_hbm [thread:$0]  %s1414_s23, 32, %s1416_s25, [#allocation5]  }
 0x78f   :  { %1769 = dma.done.wait [#allocation3], 32  }
 0x790   :  { %1770 = vsyncadd [#allocation3], 4294967264 }
 0x791   :  { %1771 = dma.done.wait [#allocation5], 32  }
 0x792   :  { %1772 = vsyncadd [#allocation5], 4294967264 }
 0x793   :  { %1427 = vsyncpa [#allocation3], 1 }
 0x794   :  { %1428 = vsyncpa [#allocation5], 1 }

</bundles_post_ra>
